<compile_context>
chip_gen: v7x
topology: tpu7x:2x2x1
jax: 0.10.0
libtpu: 0.0.40
codegen_flags: <defaults>
</compile_context>

<pallas_src>
import functools

import jax
import jax.numpy as jnp
import numpy as np
from jax import lax
from jax.experimental import pallas as pl
from jax.experimental.pallas import tpu as pltpu

# Model hyperparameters (from SequenceModel.__init__, unit_type='GRU')
N_LAYERS = 2
INPUT_SIZE = 1
OUTPUT_SIZE = 1
HIDDEN_SIZE = 10

_SUBLANE = 8      # batch / time-chunk granularity
_LANE = 128       # layer-1 gate block starts at this lane of the fused gh
_MAX_CHUNK = 128  # max timesteps per grid step (multiple of _SUBLANE)


def _cdiv(a, b):
    return -(-a // b)


def _gru_chunk_kernel(x_ref, wih0rz_ref, wih0n_ref, brz0_ref, bin0_ref,
                      whhf_ref, wih1t_ref, bin1_ref, wreg_ref, breg_ref,
                      h_all_ref, hn_ref, y_ref,
                      hcar_ref, girz_ref, gin_ref,
                      *, t_total, needs_mask, unroll):
    """One time-chunk of the 2-layer GRU + regressor.

    Per-chunk block shapes (B = sublane-padded batch, H = 10, Tc = chunk len):
      x_ref     (Tc, B, 1)        time-major input chunk
      wih0rz    (1, 1, 2H)        layer-0 W_ih rows for r/z
      wih0n     (1, 1, H)         layer-0 W_ih rows for n
      brz0      (1, 1, 2H)        layer-0 (b_ih + b_hh) for r/z
      bin0      (1, 1, H)         layer-0 b_ih for n
      whhf      (2H+1, 256)       block-diag [whh0.T | whh1.T] + bias row,
                                  layer-0 gates in lanes [0,30), layer-1 in [128,158)
      wih1t     (H, 3H)           layer-1 W_ih (transposed)
      bin1      (1, H)            layer-1 b_ih for n (only remaining per-step add)
      wreg      (1, 1, H), breg (1, 1)
      h_all_ref (Tc, B, H), hn_ref (2, B, H), y_ref (Tc, B)
      hcar_ref  (2, B, H)  VMEM scratch carrying h0/h1 across chunks
      girz_ref  (Tc, B, 2H), gin_ref (Tc, B, H)  precomputed layer-0 input path
    """
    g = pl.program_id(0)
    tc, bsz, _ = x_ref.shape
    H = HIDDEN_SIZE

    @pl.when(g == 0)
    def _init():
        hcar_ref[...] = jnp.zeros_like(hcar_ref)

    # ---- layer-0 input path for the whole chunk (off the serial per-step chain) ----
    x_c = x_ref[...]                                             # (Tc, B, 1)
    girz_ref[...] = x_c * wih0rz_ref[...] + brz0_ref[...]        # (Tc, B, 2H)
    gin_ref[...] = x_c * wih0n_ref[...] + bin0_ref[...]          # (Tc, B, H)

    # ---- loop-invariant hoists ----
    whhf = whhf_ref[...]
    wih1t = wih1t_ref[...]
    bin1 = jnp.broadcast_to(bin1_ref[...], (bsz, H))
    ones_col = jnp.ones((bsz, 1), jnp.float32)

    def step(ti, carry):
        h0, h1 = carry

        # fused hidden->gate matmul for BOTH layers + folded biases (ones column)
        hc = jnp.concatenate([h0, h1, ones_col], axis=-1)                 # (B, 2H+1)
        gh = jnp.dot(hc, whhf, preferred_element_type=jnp.float32)        # (B, 256)

        gh0_rz = gh[:, 0:2 * H]                      # lane offset 0 (free)
        gh0_n = gh[:, 2 * H:3 * H]                   # includes bhh0_n
        gh1_rz = gh[:, _LANE:_LANE + 2 * H]          # vreg boundary; incl. rz1 biases
        gh1_n = gh[:, _LANE + 2 * H:_LANE + 3 * H]   # includes bhh1_n

        # ---- layer 0 ----
        rz0 = jax.nn.sigmoid(girz_ref[ti] + gh0_rz)
        r0 = rz0[:, :H]
        n0 = jnp.tanh(gin_ref[ti] + r0 * gh0_n)
        z0 = rz0[:, H:]
        h0n = n0 + z0 * (h0 - n0)

        # ---- layer 1 ----
        gi1 = jnp.dot(h0n, wih1t, preferred_element_type=jnp.float32)     # (B, 3H)
        rz1 = jax.nn.sigmoid(gi1[:, :2 * H] + gh1_rz)
        r1 = rz1[:, :H]
        n1 = jnp.tanh(gi1[:, 2 * H:] + bin1 + r1 * gh1_n)
        z1 = rz1[:, H:]
        h1n = n1 + z1 * (h1 - n1)

        if needs_mask:  # static Python flag; only emitted when T was padded
            valid = (g * tc + ti) < t_total
            h0n = jnp.where(valid, h0n, h0)
            h1n = jnp.where(valid, h1n, h1)

        h_all_ref[ti] = h1n
        return (h0n, h1n)

    h0f, h1f = lax.fori_loop(0, tc, step, (hcar_ref[0], hcar_ref[1]), unroll=unroll)

    hcar_ref[0] = h0f
    hcar_ref[1] = h1f
    hn_ref[0] = h0f          # same block every chunk; last chunk's write persists
    hn_ref[1] = h1f

    # ---- regressor Linear(H -> 1), once per chunk, off the serial path ----
    h_c = h_all_ref[...]                                                  # (Tc, B, H)
    y_ref[...] = jnp.sum(h_c * wreg_ref[...], axis=-1) + breg_ref[...]    # (Tc, B)


def init_params(key):
    """Deterministic PyTorch-style init: U(-1/sqrt(H), 1/sqrt(H)) for all params."""
    H, I = HIDDEN_SIZE, INPUT_SIZE
    bound = 1.0 / np.sqrt(H)
    names_shapes = [
        ("wih0", (3 * H, I)), ("whh0", (3 * H, H)), ("bih0", (3 * H,)), ("bhh0", (3 * H,)),
        ("wih1", (3 * H, H)), ("whh1", (3 * H, H)), ("bih1", (3 * H,)), ("bhh1", (3 * H,)),
        ("wreg", (OUTPUT_SIZE, H)), ("breg", (OUTPUT_SIZE,)),
    ]
    keys = jax.random.split(key, len(names_shapes))
    params = {}
    for k, (name, shape) in zip(keys, names_shapes):
        params[name] = jax.random.uniform(k, shape, jnp.float32, -bound, bound)
    return params


def sequence_model_forward(x, params):
    """x: (B, T, 1) float32.  Returns (h, h_n, y_hat) matching SequenceModel.forward."""
    B, T, _ = x.shape
    H = HIDDEN_SIZE
    B_pad = _cdiv(B, _SUBLANE) * _SUBLANE

    # time-chunk size (multiple of 8, capped), pad T to a whole number of chunks
    tc = _SUBLANE * max(1, min(_MAX_CHUNK // _SUBLANE, _cdiv(T, _SUBLANE)))
    n_chunks = _cdiv(T, tc)
    T_pad = n_chunks * tc
    needs_mask = T_pad != T

    # time-major; pad batch to full sublanes and time to full chunks
    x_tm = jnp.transpose(x, (1, 0, 2)).astype(jnp.float32)               # (T, B, 1)
    x_tm = jnp.pad(x_tm, ((0, T_pad - T), (0, B_pad - B), (0, 0)))

    # fused block-diagonal recurrent weight, 128-lane-aligned gate blocks, bias row
    whhf = jnp.zeros((2 * H + 1, 2 * _LANE), jnp.float32)
    whhf = whhf.at[0:H, 0:3 * H].set(params["whh0"].T)
    whhf = whhf.at[H:2 * H, _LANE:_LANE + 3 * H].set(params["whh1"].T)
    whhf = whhf.at[2 * H, 2 * H:3 * H].set(params["bhh0"][2 * H:])
    whhf = whhf.at[2 * H, _LANE:_LANE + 2 * H].set(
        params["bih1"][:2 * H] + params["bhh1"][:2 * H])
    whhf = whhf.at[2 * H, _LANE + 2 * H:_LANE + 3 * H].set(params["bhh1"][2 * H:])

    wih0rz = params["wih0"][:2 * H, 0].reshape(1, 1, 2 * H)
    wih0n = params["wih0"][2 * H:, 0].reshape(1, 1, H)
    brz0 = (params["bih0"][:2 * H] + params["bhh0"][:2 * H]).reshape(1, 1, 2 * H)
    bin0 = params["bih0"][2 * H:].reshape(1, 1, H)
    wih1t = params["wih1"].T                                             # (H, 3H)
    bin1 = params["bih1"][2 * H:].reshape(1, H)
    wreg = params["wreg"].reshape(1, 1, H)
    breg = params["breg"].reshape(1, 1)

    kernel = functools.partial(_gru_chunk_kernel, t_total=T,
                               needs_mask=needs_mask, unroll=min(tc, 8))

    tmap3 = lambda g: (g, 0, 0)
    cmap2 = lambda g: (0, 0)
    cmap3 = lambda g: (0, 0, 0)

    h_all, h_n, y = pl.pallas_call(
        kernel,
        grid=(n_chunks,),
        in_specs=[
            pl.BlockSpec((tc, B_pad, 1), tmap3),             # x chunk
            pl.BlockSpec((1, 1, 2 * H), cmap3),              # wih0 (r/z rows)
            pl.BlockSpec((1, 1, H), cmap3),                  # wih0 (n rows)
            pl.BlockSpec((1, 1, 2 * H), cmap3),              # brz0
            pl.BlockSpec((1, 1, H), cmap3),                  # bin0
            pl.BlockSpec((2 * H + 1, 2 * _LANE), cmap2),     # whhf (fused + bias row)
            pl.BlockSpec((H, 3 * H), cmap2),                 # wih1.T
            pl.BlockSpec((1, H), cmap2),                     # bin1
            pl.BlockSpec((1, 1, H), cmap3),                  # wreg
            pl.BlockSpec((1, 1), cmap2),                     # breg
        ],
        out_specs=(
            pl.BlockSpec((tc, B_pad, H), tmap3),             # h (time-major)
            pl.BlockSpec((N_LAYERS, B_pad, H), cmap3),       # h_n
            pl.BlockSpec((tc, B_pad), lambda g: (g, 0)),     # y (2-D, no size-1 lane dim)
        ),
        out_shape=(
            jax.ShapeDtypeStruct((T_pad, B_pad, H), jnp.float32),
            jax.ShapeDtypeStruct((N_LAYERS, B_pad, H), jnp.float32),
            jax.ShapeDtypeStruct((T_pad, B_pad), jnp.float32),
        ),
        scratch_shapes=[
            pltpu.VMEM((N_LAYERS, B_pad, H), jnp.float32),   # h0/h1 carried across chunks
            pltpu.VMEM((tc, B_pad, 2 * H), jnp.float32),     # precomputed gi0 (r/z)
            pltpu.VMEM((tc, B_pad, H), jnp.float32),         # precomputed gi0 (n)
        ],
        compiler_params=pltpu.CompilerParams(dimension_semantics=("arbitrary",)),
    )(x_tm, wih0rz, wih0n, brz0, bin0, whhf, wih1t, bin1, wreg, breg)

    # Match PyTorch transposes in forward(): seq-major -> batch-major; drop padding.
    h = jnp.transpose(h_all, (1, 0, 2))[:B, :T]              # (B, T, H)
    h_n = jnp.transpose(h_n, (1, 0, 2))[:B]                  # (B, n_layers, H)
    y_hat = jnp.transpose(y, (1, 0))[:B, :T, None]           # (B, T, 1)
    return h, h_n, y_hat


def _reference_forward(x, params):
    """Pure-JAX reference (lax.scan) for a correctness check."""
    H = HIDDEN_SIZE
    x_tm = jnp.transpose(x, (1, 0, 2)).astype(jnp.float32)

    def cell(x_t, h_prev, wih, whh, bih, bhh):
        gi = x_t @ wih.T + bih
        gh = h_prev @ whh.T + bhh
        r = jax.nn.sigmoid(gi[:, :H] + gh[:, :H])
        z = jax.nn.sigmoid(gi[:, H:2 * H] + gh[:, H:2 * H])
        n = jnp.tanh(gi[:, 2 * H:] + r * gh[:, 2 * H:])
        return (1.0 - z) * n + z * h_prev

    def step(carry, x_t):
        h0, h1 = carry
        h0 = cell(x_t, h0, params["wih0"], params["whh0"], params["bih0"], params["bhh0"])
        h1 = cell(h0, h1, params["wih1"], params["whh1"], params["bih1"], params["bhh1"])
        return (h0, h1), h1

    B = x.shape[0]
    (h0f, h1f), hs = jax.lax.scan(step, (jnp.zeros((B, H)), jnp.zeros((B, H))), x_tm)
    h = jnp.transpose(hs, (1, 0, 2))
    h_n = jnp.stack([h0f, h1f], axis=1)
    y = h @ params["wreg"].T + params["breg"]
    return h, h_n, y


if __name__ == "__main__":
    B, T = 2, 8
    key = jax.random.PRNGKey(0)
    k_param, k_x = jax.random.split(key)
    params = init_params(k_param)
    x = jax.random.normal(k_x, (B, T, INPUT_SIZE), dtype=jnp.float32)

    h, h_n, y_hat = jax.block_until_ready(sequence_model_forward(x, params))

    # sanity check against pure-JAX reference
    h_r, hn_r, y_r = _reference_forward(x, params)
    np.testing.assert_allclose(np.asarray(h), np.asarray(h_r), rtol=2e-5, atol=2e-5)
    np.testing.assert_allclose(np.asarray(h_n), np.asarray(hn_r), rtol=2e-5, atol=2e-5)
    np.testing.assert_allclose(np.asarray(y_hat), np.asarray(y_r), rtol=2e-5, atol=2e-5)

    assert h.shape == (B, T, HIDDEN_SIZE)
    assert h_n.shape == (B, N_LAYERS, HIDDEN_SIZE)
    assert y_hat.shape == (B, T, OUTPUT_SIZE)
    print("KERNEL_OK")
</pallas_src>

<mosaic_0001>
module attributes {stable_mosaic.version = 11 : i64} {
  func.func @_gru_chunk_kernel(%arg0: i32, %arg1: memref<8x8x1xf32, #tpu.memory_space<vmem>>, %arg2: memref<1x1x20xf32, #tpu.memory_space<vmem>>, %arg3: memref<1x1x10xf32, #tpu.memory_space<vmem>>, %arg4: memref<1x1x20xf32, #tpu.memory_space<vmem>>, %arg5: memref<1x1x10xf32, #tpu.memory_space<vmem>>, %arg6: memref<21x256xf32, #tpu.memory_space<vmem>>, %arg7: memref<10x30xf32, #tpu.memory_space<vmem>>, %arg8: memref<1x10xf32, #tpu.memory_space<vmem>>, %arg9: memref<1x1x10xf32, #tpu.memory_space<vmem>>, %arg10: memref<1x1xf32, #tpu.memory_space<vmem>>, %arg11: memref<8x8x10xf32, #tpu.memory_space<vmem>>, %arg12: memref<2x8x10xf32, #tpu.memory_space<vmem>>, %arg13: memref<8x8xf32, #tpu.memory_space<vmem>>, %arg14: memref<2x8x10xf32, #tpu.memory_space<vmem>>, %arg15: memref<8x8x20xf32, #tpu.memory_space<vmem>>, %arg16: memref<8x8x10xf32, #tpu.memory_space<vmem>>) attributes {dimension_semantics = [#tpu.dimension_semantics<arbitrary>], iteration_bounds = array<i64: 1>, scalar_prefetch = 0 : i64, scratch_operands = 3 : i64, tpu.core_type = #tpu.core_type<tc>, window_params = [{transform_indices = @transform_0, window_bounds = array<i64: 8, 8, 1>}, {pipeline_mode = #tpu.pipeline_mode<synchronous>, transform_indices = @transform_1, window_bounds = array<i64: 1, 1, 20>}, {pipeline_mode = #tpu.pipeline_mode<synchronous>, transform_indices = @transform_2, window_bounds = array<i64: 1, 1, 10>}, {pipeline_mode = #tpu.pipeline_mode<synchronous>, transform_indices = @transform_3, window_bounds = array<i64: 1, 1, 20>}, {pipeline_mode = #tpu.pipeline_mode<synchronous>, transform_indices = @transform_4, window_bounds = array<i64: 1, 1, 10>}, {pipeline_mode = #tpu.pipeline_mode<synchronous>, transform_indices = @transform_5, window_bounds = array<i64: 21, 256>}, {pipeline_mode = #tpu.pipeline_mode<synchronous>, transform_indices = @transform_6, window_bounds = array<i64: 10, 30>}, {pipeline_mode = #tpu.pipeline_mode<synchronous>, transform_indices = @transform_7, window_bounds = array<i64: 1, 10>}, {pipeline_mode = #tpu.pipeline_mode<synchronous>, transform_indices = @transform_8, window_bounds = array<i64: 1, 1, 10>}, {pipeline_mode = #tpu.pipeline_mode<synchronous>, transform_indices = @transform_9, window_bounds = array<i64: 1, 1>}, {transform_indices = @transform_10, window_bounds = array<i64: 8, 8, 10>}, {pipeline_mode = #tpu.pipeline_mode<synchronous>, transform_indices = @transform_11, window_bounds = array<i64: 2, 8, 10>}, {transform_indices = @transform_12, window_bounds = array<i64: 8, 8>}]} {
    %c0_i32 = arith.constant 0 : i32
    %0 = arith.cmpi eq, %arg0, %c0_i32 : i32
    %1 = arith.extui %0 : i1 to i32
    %c0_i32_0 = arith.constant 0 : i32
    %2 = arith.cmpi ne, %1, %c0_i32_0 : i32
    scf.if %2 {
      %cst_136 = arith.constant 0.000000e+00 : f32
      %435 = vector.broadcast %cst_136 : f32 to vector<2x8x10xf32>
      %c0_137 = arith.constant 0 : index
      %c0_138 = arith.constant 0 : index
      %c0_139 = arith.constant 0 : index
      %436 = vector.load %arg14[%c0_137, %c0_138, %c0_139] : memref<2x8x10xf32, #tpu.memory_space<vmem>>, vector<2x8x10xf32>
      tpu.vector_store %arg14[%c0_137, %c0_138, %c0_139], %435 {strides = array<i32>} : memref<2x8x10xf32, #tpu.memory_space<vmem>>, vector<2x8x10xf32>,
    } else {
    }
    %c0 = arith.constant 0 : index
    %c0_1 = arith.constant 0 : index
    %c0_2 = arith.constant 0 : index
    %3 = vector.load %arg1[%c0, %c0_1, %c0_2] : memref<8x8x1xf32, #tpu.memory_space<vmem>>, vector<8x8x1xf32>
    %c0_3 = arith.constant 0 : index
    %c0_4 = arith.constant 0 : index
    %c0_5 = arith.constant 0 : index
    %4 = vector.load %arg2[%c0_3, %c0_4, %c0_5] : memref<1x1x20xf32, #tpu.memory_space<vmem>>, vector<1x1x20xf32>
    %5 = vector.broadcast %3 : vector<8x8x1xf32> to vector<8x8x20xf32>
    %6 = vector.broadcast %4 : vector<1x1x20xf32> to vector<8x8x20xf32>
    %7 = arith.mulf %5, %6 : vector<8x8x20xf32>
    %c0_6 = arith.constant 0 : index
    %c0_7 = arith.constant 0 : index
    %c0_8 = arith.constant 0 : index
    %8 = vector.load %arg4[%c0_6, %c0_7, %c0_8] : memref<1x1x20xf32, #tpu.memory_space<vmem>>, vector<1x1x20xf32>
    %9 = vector.broadcast %8 : vector<1x1x20xf32> to vector<8x8x20xf32>
    %10 = arith.addf %7, %9 : vector<8x8x20xf32>
    %c0_9 = arith.constant 0 : index
    %c0_10 = arith.constant 0 : index
    %c0_11 = arith.constant 0 : index
    %11 = vector.load %arg15[%c0_9, %c0_10, %c0_11] : memref<8x8x20xf32, #tpu.memory_space<vmem>>, vector<8x8x20xf32>
    tpu.vector_store %arg15[%c0_9, %c0_10, %c0_11], %10 {strides = array<i32>} : memref<8x8x20xf32, #tpu.memory_space<vmem>>, vector<8x8x20xf32>,
    %c0_12 = arith.constant 0 : index
    %c0_13 = arith.constant 0 : index
    %c0_14 = arith.constant 0 : index
    %12 = vector.load %arg3[%c0_12, %c0_13, %c0_14] : memref<1x1x10xf32, #tpu.memory_space<vmem>>, vector<1x1x10xf32>
    %13 = vector.broadcast %3 : vector<8x8x1xf32> to vector<8x8x10xf32>
    %14 = vector.broadcast %12 : vector<1x1x10xf32> to vector<8x8x10xf32>
    %15 = arith.mulf %13, %14 : vector<8x8x10xf32>
    %c0_15 = arith.constant 0 : index
    %c0_16 = arith.constant 0 : index
    %c0_17 = arith.constant 0 : index
    %16 = vector.load %arg5[%c0_15, %c0_16, %c0_17] : memref<1x1x10xf32, #tpu.memory_space<vmem>>, vector<1x1x10xf32>
    %17 = vector.broadcast %16 : vector<1x1x10xf32> to vector<8x8x10xf32>
    %18 = arith.addf %15, %17 : vector<8x8x10xf32>
    %c0_18 = arith.constant 0 : index
    %c0_19 = arith.constant 0 : index
    %c0_20 = arith.constant 0 : index
    %19 = vector.load %arg16[%c0_18, %c0_19, %c0_20] : memref<8x8x10xf32, #tpu.memory_space<vmem>>, vector<8x8x10xf32>
    tpu.vector_store %arg16[%c0_18, %c0_19, %c0_20], %18 {strides = array<i32>} : memref<8x8x10xf32, #tpu.memory_space<vmem>>, vector<8x8x10xf32>,
    %c0_21 = arith.constant 0 : index
    %c0_22 = arith.constant 0 : index
    %20 = vector.load %arg6[%c0_21, %c0_22] : memref<21x256xf32, #tpu.memory_space<vmem>>, vector<21x256xf32>
    %c0_23 = arith.constant 0 : index
    %c0_24 = arith.constant 0 : index
    %21 = vector.load %arg7[%c0_23, %c0_24] : memref<10x30xf32, #tpu.memory_space<vmem>>, vector<10x30xf32>
    %c0_25 = arith.constant 0 : index
    %c0_26 = arith.constant 0 : index
    %22 = vector.load %arg8[%c0_25, %c0_26] : memref<1x10xf32, #tpu.memory_space<vmem>>, vector<1x10xf32>
    %23 = vector.shape_cast %22 : vector<1x10xf32> to vector<1x10xf32>
    %24 = vector.broadcast %23 : vector<1x10xf32> to vector<8x10xf32>
    %cst = arith.constant 1.000000e+00 : f32
    %25 = vector.broadcast %cst : f32 to vector<8x1xf32>
    %c0_27 = arith.constant 0 : index
    %c0_28 = arith.constant 0 : index
    %c0_29 = arith.constant 0 : index
    %26 = vector.load %arg14[%c0_27, %c0_28, %c0_29] : memref<2x8x10xf32, #tpu.memory_space<vmem>>, vector<1x8x10xf32>
    %27 = vector.shape_cast %26 : vector<1x8x10xf32> to vector<8x10xf32>
    %c1 = arith.constant 1 : index
    %c0_30 = arith.constant 0 : index
    %c0_31 = arith.constant 0 : index
    %28 = vector.load %arg14[%c1, %c0_30, %c0_31] : memref<2x8x10xf32, #tpu.memory_space<vmem>>, vector<1x8x10xf32>
    %29 = vector.shape_cast %28 : vector<1x8x10xf32> to vector<8x10xf32>
    %c0_i32_32 = arith.constant 0 : i32
    %30 = tpu.concatenate %27, %29, %25 in 1 : vector<8x10xf32>, vector<8x10xf32>, vector<8x1xf32> -> vector<8x21xf32>
    %cst_33 = arith.constant dense<0.000000e+00> : vector<8x256xf32>
    %31 = tpu.matmul %30, %20, %cst_33 {dimension_numbers = #tpu.dot_dimension_numbers<[1], [0], [0], [1], [0, 0, 1, 1], [], []>} : vector<8x21xf32>, vector<21x256xf32>, vector<8x256xf32> -> vector<8x256xf32>
    %32 = vector.extract_strided_slice %31 {offsets = [0, 0], sizes = [8, 20], strides = [1, 1]} : vector<8x256xf32> to vector<8x20xf32>
    %33 = vector.extract_strided_slice %31 {offsets = [0, 20], sizes = [8, 10], strides = [1, 1]} : vector<8x256xf32> to vector<8x10xf32>
    %34 = vector.extract_strided_slice %31 {offsets = [0, 128], sizes = [8, 20], strides = [1, 1]} : vector<8x256xf32> to vector<8x20xf32>
    %35 = vector.extract_strided_slice %31 {offsets = [0, 148], sizes = [8, 10], strides = [1, 1]} : vector<8x256xf32> to vector<8x10xf32>
    %36 = arith.index_cast %c0_i32_32 : i32 to index
    %c0_34 = arith.constant 0 : index
    %c0_35 = arith.constant 0 : index
    %37 = vector.load %arg15[%36, %c0_34, %c0_35] : memref<8x8x20xf32, #tpu.memory_space<vmem>>, vector<1x8x20xf32>
    %38 = vector.shape_cast %37 : vector<1x8x20xf32> to vector<8x20xf32>
    %39 = arith.addf %38, %32 : vector<8x20xf32>
    %40 = arith.negf %39 : vector<8x20xf32>
    %41 = math.exp %40 : vector<8x20xf32>
    %cst_36 = arith.constant 1.000000e+00 : f32
    %42 = vector.broadcast %cst_36 : f32 to vector<8x20xf32>
    %43 = arith.addf %42, %41 : vector<8x20xf32>
    %44 = arith.divf %42, %43 : vector<8x20xf32>
    %45 = vector.extract_strided_slice %44 {offsets = [0, 0], sizes = [8, 10], strides = [1, 1]} : vector<8x20xf32> to vector<8x10xf32>
    %46 = arith.index_cast %c0_i32_32 : i32 to index
    %c0_37 = arith.constant 0 : index
    %c0_38 = arith.constant 0 : index
    %47 = vector.load %arg16[%46, %c0_37, %c0_38] : memref<8x8x10xf32, #tpu.memory_space<vmem>>, vector<1x8x10xf32>
    %48 = vector.shape_cast %47 : vector<1x8x10xf32> to vector<8x10xf32>
    %49 = arith.mulf %45, %33 : vector<8x10xf32>
    %50 = arith.addf %48, %49 : vector<8x10xf32>
    %51 = math.tanh %50 : vector<8x10xf32>
    %52 = vector.extract_strided_slice %44 {offsets = [0, 10], sizes = [8, 10], strides = [1, 1]} : vector<8x20xf32> to vector<8x10xf32>
    %53 = arith.subf %27, %51 : vector<8x10xf32>
    %54 = arith.mulf %52, %53 : vector<8x10xf32>
    %55 = arith.addf %51, %54 : vector<8x10xf32>
    %cst_39 = arith.constant dense<0.000000e+00> : vector<8x30xf32>
    %56 = tpu.matmul %55, %21, %cst_39 {dimension_numbers = #tpu.dot_dimension_numbers<[1], [0], [0], [1], [0, 0, 1, 1], [], []>} : vector<8x10xf32>, vector<10x30xf32>, vector<8x30xf32> -> vector<8x30xf32>
    %57 = vector.extract_strided_slice %56 {offsets = [0, 0], sizes = [8, 20], strides = [1, 1]} : vector<8x30xf32> to vector<8x20xf32>
    %58 = arith.addf %57, %34 : vector<8x20xf32>
    %59 = arith.negf %58 : vector<8x20xf32>
    %60 = math.exp %59 : vector<8x20xf32>
    %cst_40 = arith.constant 1.000000e+00 : f32
    %61 = vector.broadcast %cst_40 : f32 to vector<8x20xf32>
    %62 = arith.addf %61, %60 : vector<8x20xf32>
    %63 = arith.divf %61, %62 : vector<8x20xf32>
    %64 = vector.extract_strided_slice %63 {offsets = [0, 0], sizes = [8, 10], strides = [1, 1]} : vector<8x20xf32> to vector<8x10xf32>
    %65 = vector.extract_strided_slice %56 {offsets = [0, 20], sizes = [8, 10], strides = [1, 1]} : vector<8x30xf32> to vector<8x10xf32>
    %66 = arith.addf %65, %24 : vector<8x10xf32>
    %67 = arith.mulf %64, %35 : vector<8x10xf32>
    %68 = arith.addf %66, %67 : vector<8x10xf32>
    %69 = math.tanh %68 : vector<8x10xf32>
    %70 = vector.extract_strided_slice %63 {offsets = [0, 10], sizes = [8, 10], strides = [1, 1]} : vector<8x20xf32> to vector<8x10xf32>
    %71 = arith.subf %29, %69 : vector<8x10xf32>
    %72 = arith.mulf %70, %71 : vector<8x10xf32>
    %73 = arith.addf %69, %72 : vector<8x10xf32>
    %74 = arith.index_cast %c0_i32_32 : i32 to index
    %c0_41 = arith.constant 0 : index
    %c0_42 = arith.constant 0 : index
    %75 = vector.load %arg11[%74, %c0_41, %c0_42] : memref<8x8x10xf32, #tpu.memory_space<vmem>>, vector<1x8x10xf32>
    %76 = vector.shape_cast %75 : vector<1x8x10xf32> to vector<8x10xf32>
    %77 = vector.shape_cast %73 : vector<8x10xf32> to vector<1x8x10xf32>
    tpu.vector_store %arg11[%74, %c0_41, %c0_42], %77 {strides = array<i32>} : memref<8x8x10xf32, #tpu.memory_space<vmem>>, vector<1x8x10xf32>,
    %c1_i32 = arith.constant 1 : i32
    %78 = tpu.concatenate %55, %73, %25 in 1 : vector<8x10xf32>, vector<8x10xf32>, vector<8x1xf32> -> vector<8x21xf32>
    %cst_43 = arith.constant dense<0.000000e+00> : vector<8x256xf32>
    %79 = tpu.matmul %78, %20, %cst_43 {dimension_numbers = #tpu.dot_dimension_numbers<[1], [0], [0], [1], [0, 0, 1, 1], [], []>} : vector<8x21xf32>, vector<21x256xf32>, vector<8x256xf32> -> vector<8x256xf32>
    %80 = vector.extract_strided_slice %79 {offsets = [0, 0], sizes = [8, 20], strides = [1, 1]} : vector<8x256xf32> to vector<8x20xf32>
    %81 = vector.extract_strided_slice %79 {offsets = [0, 20], sizes = [8, 10], strides = [1, 1]} : vector<8x256xf32> to vector<8x10xf32>
    %82 = vector.extract_strided_slice %79 {offsets = [0, 128], sizes = [8, 20], strides = [1, 1]} : vector<8x256xf32> to vector<8x20xf32>
    %83 = vector.extract_strided_slice %79 {offsets = [0, 148], sizes = [8, 10], strides = [1, 1]} : vector<8x256xf32> to vector<8x10xf32>
    %84 = arith.index_cast %c1_i32 : i32 to index
    %c0_44 = arith.constant 0 : index
    %c0_45 = arith.constant 0 : index
    %85 = vector.load %arg15[%84, %c0_44, %c0_45] : memref<8x8x20xf32, #tpu.memory_space<vmem>>, vector<1x8x20xf32>
    %86 = vector.shape_cast %85 : vector<1x8x20xf32> to vector<8x20xf32>
    %87 = arith.addf %86, %80 : vector<8x20xf32>
    %88 = arith.negf %87 : vector<8x20xf32>
    %89 = math.exp %88 : vector<8x20xf32>
    %cst_46 = arith.constant 1.000000e+00 : f32
    %90 = vector.broadcast %cst_46 : f32 to vector<8x20xf32>
    %91 = arith.addf %90, %89 : vector<8x20xf32>
    %92 = arith.divf %90, %91 : vector<8x20xf32>
    %93 = vector.extract_strided_slice %92 {offsets = [0, 0], sizes = [8, 10], strides = [1, 1]} : vector<8x20xf32> to vector<8x10xf32>
    %94 = arith.index_cast %c1_i32 : i32 to index
    %c0_47 = arith.constant 0 : index
    %c0_48 = arith.constant 0 : index
    %95 = vector.load %arg16[%94, %c0_47, %c0_48] : memref<8x8x10xf32, #tpu.memory_space<vmem>>, vector<1x8x10xf32>
    %96 = vector.shape_cast %95 : vector<1x8x10xf32> to vector<8x10xf32>
    %97 = arith.mulf %93, %81 : vector<8x10xf32>
    %98 = arith.addf %96, %97 : vector<8x10xf32>
    %99 = math.tanh %98 : vector<8x10xf32>
    %100 = vector.extract_strided_slice %92 {offsets = [0, 10], sizes = [8, 10], strides = [1, 1]} : vector<8x20xf32> to vector<8x10xf32>
    %101 = arith.subf %55, %99 : vector<8x10xf32>
    %102 = arith.mulf %100, %101 : vector<8x10xf32>
    %103 = arith.addf %99, %102 : vector<8x10xf32>
    %cst_49 = arith.constant dense<0.000000e+00> : vector<8x30xf32>
    %104 = tpu.matmul %103, %21, %cst_49 {dimension_numbers = #tpu.dot_dimension_numbers<[1], [0], [0], [1], [0, 0, 1, 1], [], []>} : vector<8x10xf32>, vector<10x30xf32>, vector<8x30xf32> -> vector<8x30xf32>
    %105 = vector.extract_strided_slice %104 {offsets = [0, 0], sizes = [8, 20], strides = [1, 1]} : vector<8x30xf32> to vector<8x20xf32>
    %106 = arith.addf %105, %82 : vector<8x20xf32>
    %107 = arith.negf %106 : vector<8x20xf32>
    %108 = math.exp %107 : vector<8x20xf32>
    %cst_50 = arith.constant 1.000000e+00 : f32
    %109 = vector.broadcast %cst_50 : f32 to vector<8x20xf32>
    %110 = arith.addf %109, %108 : vector<8x20xf32>
    %111 = arith.divf %109, %110 : vector<8x20xf32>
    %112 = vector.extract_strided_slice %111 {offsets = [0, 0], sizes = [8, 10], strides = [1, 1]} : vector<8x20xf32> to vector<8x10xf32>
    %113 = vector.extract_strided_slice %104 {offsets = [0, 20], sizes = [8, 10], strides = [1, 1]} : vector<8x30xf32> to vector<8x10xf32>
    %114 = arith.addf %113, %24 : vector<8x10xf32>
    %115 = arith.mulf %112, %83 : vector<8x10xf32>
    %116 = arith.addf %114, %115 : vector<8x10xf32>
    %117 = math.tanh %116 : vector<8x10xf32>
    %118 = vector.extract_strided_slice %111 {offsets = [0, 10], sizes = [8, 10], strides = [1, 1]} : vector<8x20xf32> to vector<8x10xf32>
    %119 = arith.subf %73, %117 : vector<8x10xf32>
    %120 = arith.mulf %118, %119 : vector<8x10xf32>
    %121 = arith.addf %117, %120 : vector<8x10xf32>
    %122 = arith.index_cast %c1_i32 : i32 to index
    %c0_51 = arith.constant 0 : index
    %c0_52 = arith.constant 0 : index
    %123 = vector.load %arg11[%122, %c0_51, %c0_52] : memref<8x8x10xf32, #tpu.memory_space<vmem>>, vector<1x8x10xf32>
    %124 = vector.shape_cast %123 : vector<1x8x10xf32> to vector<8x10xf32>
    %125 = vector.shape_cast %121 : vector<8x10xf32> to vector<1x8x10xf32>
    tpu.vector_store %arg11[%122, %c0_51, %c0_52], %125 {strides = array<i32>} : memref<8x8x10xf32, #tpu.memory_space<vmem>>, vector<1x8x10xf32>,
    %c2_i32 = arith.constant 2 : i32
    %126 = tpu.concatenate %103, %121, %25 in 1 : vector<8x10xf32>, vector<8x10xf32>, vector<8x1xf32> -> vector<8x21xf32>
    %cst_53 = arith.constant dense<0.000000e+00> : vector<8x256xf32>
    %127 = tpu.matmul %126, %20, %cst_53 {dimension_numbers = #tpu.dot_dimension_numbers<[1], [0], [0], [1], [0, 0, 1, 1], [], []>} : vector<8x21xf32>, vector<21x256xf32>, vector<8x256xf32> -> vector<8x256xf32>
    %128 = vector.extract_strided_slice %127 {offsets = [0, 0], sizes = [8, 20], strides = [1, 1]} : vector<8x256xf32> to vector<8x20xf32>
    %129 = vector.extract_strided_slice %127 {offsets = [0, 20], sizes = [8, 10], strides = [1, 1]} : vector<8x256xf32> to vector<8x10xf32>
    %130 = vector.extract_strided_slice %127 {offsets = [0, 128], sizes = [8, 20], strides = [1, 1]} : vector<8x256xf32> to vector<8x20xf32>
    %131 = vector.extract_strided_slice %127 {offsets = [0, 148], sizes = [8, 10], strides = [1, 1]} : vector<8x256xf32> to vector<8x10xf32>
    %132 = arith.index_cast %c2_i32 : i32 to index
    %c0_54 = arith.constant 0 : index
    %c0_55 = arith.constant 0 : index
    %133 = vector.load %arg15[%132, %c0_54, %c0_55] : memref<8x8x20xf32, #tpu.memory_space<vmem>>, vector<1x8x20xf32>
    %134 = vector.shape_cast %133 : vector<1x8x20xf32> to vector<8x20xf32>
    %135 = arith.addf %134, %128 : vector<8x20xf32>
    %136 = arith.negf %135 : vector<8x20xf32>
    %137 = math.exp %136 : vector<8x20xf32>
    %cst_56 = arith.constant 1.000000e+00 : f32
    %138 = vector.broadcast %cst_56 : f32 to vector<8x20xf32>
    %139 = arith.addf %138, %137 : vector<8x20xf32>
    %140 = arith.divf %138, %139 : vector<8x20xf32>
    %141 = vector.extract_strided_slice %140 {offsets = [0, 0], sizes = [8, 10], strides = [1, 1]} : vector<8x20xf32> to vector<8x10xf32>
    %142 = arith.index_cast %c2_i32 : i32 to index
    %c0_57 = arith.constant 0 : index
    %c0_58 = arith.constant 0 : index
    %143 = vector.load %arg16[%142, %c0_57, %c0_58] : memref<8x8x10xf32, #tpu.memory_space<vmem>>, vector<1x8x10xf32>
    %144 = vector.shape_cast %143 : vector<1x8x10xf32> to vector<8x10xf32>
    %145 = arith.mulf %141, %129 : vector<8x10xf32>
    %146 = arith.addf %144, %145 : vector<8x10xf32>
    %147 = math.tanh %146 : vector<8x10xf32>
    %148 = vector.extract_strided_slice %140 {offsets = [0, 10], sizes = [8, 10], strides = [1, 1]} : vector<8x20xf32> to vector<8x10xf32>
    %149 = arith.subf %103, %147 : vector<8x10xf32>
    %150 = arith.mulf %148, %149 : vector<8x10xf32>
    %151 = arith.addf %147, %150 : vector<8x10xf32>
    %cst_59 = arith.constant dense<0.000000e+00> : vector<8x30xf32>
    %152 = tpu.matmul %151, %21, %cst_59 {dimension_numbers = #tpu.dot_dimension_numbers<[1], [0], [0], [1], [0, 0, 1, 1], [], []>} : vector<8x10xf32>, vector<10x30xf32>, vector<8x30xf32> -> vector<8x30xf32>
    %153 = vector.extract_strided_slice %152 {offsets = [0, 0], sizes = [8, 20], strides = [1, 1]} : vector<8x30xf32> to vector<8x20xf32>
    %154 = arith.addf %153, %130 : vector<8x20xf32>
    %155 = arith.negf %154 : vector<8x20xf32>
    %156 = math.exp %155 : vector<8x20xf32>
    %cst_60 = arith.constant 1.000000e+00 : f32
    %157 = vector.broadcast %cst_60 : f32 to vector<8x20xf32>
    %158 = arith.addf %157, %156 : vector<8x20xf32>
    %159 = arith.divf %157, %158 : vector<8x20xf32>
    %160 = vector.extract_strided_slice %159 {offsets = [0, 0], sizes = [8, 10], strides = [1, 1]} : vector<8x20xf32> to vector<8x10xf32>
    %161 = vector.extract_strided_slice %152 {offsets = [0, 20], sizes = [8, 10], strides = [1, 1]} : vector<8x30xf32> to vector<8x10xf32>
    %162 = arith.addf %161, %24 : vector<8x10xf32>
    %163 = arith.mulf %160, %131 : vector<8x10xf32>
    %164 = arith.addf %162, %163 : vector<8x10xf32>
    %165 = math.tanh %164 : vector<8x10xf32>
    %166 = vector.extract_strided_slice %159 {offsets = [0, 10], sizes = [8, 10], strides = [1, 1]} : vector<8x20xf32> to vector<8x10xf32>
    %167 = arith.subf %121, %165 : vector<8x10xf32>
    %168 = arith.mulf %166, %167 : vector<8x10xf32>
    %169 = arith.addf %165, %168 : vector<8x10xf32>
    %170 = arith.index_cast %c2_i32 : i32 to index
    %c0_61 = arith.constant 0 : index
    %c0_62 = arith.constant 0 : index
    %171 = vector.load %arg11[%170, %c0_61, %c0_62] : memref<8x8x10xf32, #tpu.memory_space<vmem>>, vector<1x8x10xf32>
    %172 = vector.shape_cast %171 : vector<1x8x10xf32> to vector<8x10xf32>
    %173 = vector.shape_cast %169 : vector<8x10xf32> to vector<1x8x10xf32>
    tpu.vector_store %arg11[%170, %c0_61, %c0_62], %173 {strides = array<i32>} : memref<8x8x10xf32, #tpu.memory_space<vmem>>, vector<1x8x10xf32>,
    %c3_i32 = arith.constant 3 : i32
    %174 = tpu.concatenate %151, %169, %25 in 1 : vector<8x10xf32>, vector<8x10xf32>, vector<8x1xf32> -> vector<8x21xf32>
    %cst_63 = arith.constant dense<0.000000e+00> : vector<8x256xf32>
    %175 = tpu.matmul %174, %20, %cst_63 {dimension_numbers = #tpu.dot_dimension_numbers<[1], [0], [0], [1], [0, 0, 1, 1], [], []>} : vector<8x21xf32>, vector<21x256xf32>, vector<8x256xf32> -> vector<8x256xf32>
    %176 = vector.extract_strided_slice %175 {offsets = [0, 0], sizes = [8, 20], strides = [1, 1]} : vector<8x256xf32> to vector<8x20xf32>
    %177 = vector.extract_strided_slice %175 {offsets = [0, 20], sizes = [8, 10], strides = [1, 1]} : vector<8x256xf32> to vector<8x10xf32>
    %178 = vector.extract_strided_slice %175 {offsets = [0, 128], sizes = [8, 20], strides = [1, 1]} : vector<8x256xf32> to vector<8x20xf32>
    %179 = vector.extract_strided_slice %175 {offsets = [0, 148], sizes = [8, 10], strides = [1, 1]} : vector<8x256xf32> to vector<8x10xf32>
    %180 = arith.index_cast %c3_i32 : i32 to index
    %c0_64 = arith.constant 0 : index
    %c0_65 = arith.constant 0 : index
    %181 = vector.load %arg15[%180, %c0_64, %c0_65] : memref<8x8x20xf32, #tpu.memory_space<vmem>>, vector<1x8x20xf32>
    %182 = vector.shape_cast %181 : vector<1x8x20xf32> to vector<8x20xf32>
    %183 = arith.addf %182, %176 : vector<8x20xf32>
    %184 = arith.negf %183 : vector<8x20xf32>
    %185 = math.exp %184 : vector<8x20xf32>
    %cst_66 = arith.constant 1.000000e+00 : f32
    %186 = vector.broadcast %cst_66 : f32 to vector<8x20xf32>
    %187 = arith.addf %186, %185 : vector<8x20xf32>
    %188 = arith.divf %186, %187 : vector<8x20xf32>
    %189 = vector.extract_strided_slice %188 {offsets = [0, 0], sizes = [8, 10], strides = [1, 1]} : vector<8x20xf32> to vector<8x10xf32>
    %190 = arith.index_cast %c3_i32 : i32 to index
    %c0_67 = arith.constant 0 : index
    %c0_68 = arith.constant 0 : index
    %191 = vector.load %arg16[%190, %c0_67, %c0_68] : memref<8x8x10xf32, #tpu.memory_space<vmem>>, vector<1x8x10xf32>
    %192 = vector.shape_cast %191 : vector<1x8x10xf32> to vector<8x10xf32>
    %193 = arith.mulf %189, %177 : vector<8x10xf32>
    %194 = arith.addf %192, %193 : vector<8x10xf32>
    %195 = math.tanh %194 : vector<8x10xf32>
    %196 = vector.extract_strided_slice %188 {offsets = [0, 10], sizes = [8, 10], strides = [1, 1]} : vector<8x20xf32> to vector<8x10xf32>
    %197 = arith.subf %151, %195 : vector<8x10xf32>
    %198 = arith.mulf %196, %197 : vector<8x10xf32>
    %199 = arith.addf %195, %198 : vector<8x10xf32>
    %cst_69 = arith.constant dense<0.000000e+00> : vector<8x30xf32>
    %200 = tpu.matmul %199, %21, %cst_69 {dimension_numbers = #tpu.dot_dimension_numbers<[1], [0], [0], [1], [0, 0, 1, 1], [], []>} : vector<8x10xf32>, vector<10x30xf32>, vector<8x30xf32> -> vector<8x30xf32>
    %201 = vector.extract_strided_slice %200 {offsets = [0, 0], sizes = [8, 20], strides = [1, 1]} : vector<8x30xf32> to vector<8x20xf32>
    %202 = arith.addf %201, %178 : vector<8x20xf32>
    %203 = arith.negf %202 : vector<8x20xf32>
    %204 = math.exp %203 : vector<8x20xf32>
    %cst_70 = arith.constant 1.000000e+00 : f32
    %205 = vector.broadcast %cst_70 : f32 to vector<8x20xf32>
    %206 = arith.addf %205, %204 : vector<8x20xf32>
    %207 = arith.divf %205, %206 : vector<8x20xf32>
    %208 = vector.extract_strided_slice %207 {offsets = [0, 0], sizes = [8, 10], strides = [1, 1]} : vector<8x20xf32> to vector<8x10xf32>
    %209 = vector.extract_strided_slice %200 {offsets = [0, 20], sizes = [8, 10], strides = [1, 1]} : vector<8x30xf32> to vector<8x10xf32>
    %210 = arith.addf %209, %24 : vector<8x10xf32>
    %211 = arith.mulf %208, %179 : vector<8x10xf32>
    %212 = arith.addf %210, %211 : vector<8x10xf32>
    %213 = math.tanh %212 : vector<8x10xf32>
    %214 = vector.extract_strided_slice %207 {offsets = [0, 10], sizes = [8, 10], strides = [1, 1]} : vector<8x20xf32> to vector<8x10xf32>
    %215 = arith.subf %169, %213 : vector<8x10xf32>
    %216 = arith.mulf %214, %215 : vector<8x10xf32>
    %217 = arith.addf %213, %216 : vector<8x10xf32>
    %218 = arith.index_cast %c3_i32 : i32 to index
    %c0_71 = arith.constant 0 : index
    %c0_72 = arith.constant 0 : index
    %219 = vector.load %arg11[%218, %c0_71, %c0_72] : memref<8x8x10xf32, #tpu.memory_space<vmem>>, vector<1x8x10xf32>
    %220 = vector.shape_cast %219 : vector<1x8x10xf32> to vector<8x10xf32>
    %221 = vector.shape_cast %217 : vector<8x10xf32> to vector<1x8x10xf32>
    tpu.vector_store %arg11[%218, %c0_71, %c0_72], %221 {strides = array<i32>} : memref<8x8x10xf32, #tpu.memory_space<vmem>>, vector<1x8x10xf32>,
    %c4_i32 = arith.constant 4 : i32
    %222 = tpu.concatenate %199, %217, %25 in 1 : vector<8x10xf32>, vector<8x10xf32>, vector<8x1xf32> -> vector<8x21xf32>
    %cst_73 = arith.constant dense<0.000000e+00> : vector<8x256xf32>
    %223 = tpu.matmul %222, %20, %cst_73 {dimension_numbers = #tpu.dot_dimension_numbers<[1], [0], [0], [1], [0, 0, 1, 1], [], []>} : vector<8x21xf32>, vector<21x256xf32>, vector<8x256xf32> -> vector<8x256xf32>
    %224 = vector.extract_strided_slice %223 {offsets = [0, 0], sizes = [8, 20], strides = [1, 1]} : vector<8x256xf32> to vector<8x20xf32>
    %225 = vector.extract_strided_slice %223 {offsets = [0, 20], sizes = [8, 10], strides = [1, 1]} : vector<8x256xf32> to vector<8x10xf32>
    %226 = vector.extract_strided_slice %223 {offsets = [0, 128], sizes = [8, 20], strides = [1, 1]} : vector<8x256xf32> to vector<8x20xf32>
    %227 = vector.extract_strided_slice %223 {offsets = [0, 148], sizes = [8, 10], strides = [1, 1]} : vector<8x256xf32> to vector<8x10xf32>
    %228 = arith.index_cast %c4_i32 : i32 to index
    %c0_74 = arith.constant 0 : index
    %c0_75 = arith.constant 0 : index
    %229 = vector.load %arg15[%228, %c0_74, %c0_75] : memref<8x8x20xf32, #tpu.memory_space<vmem>>, vector<1x8x20xf32>
    %230 = vector.shape_cast %229 : vector<1x8x20xf32> to vector<8x20xf32>
    %231 = arith.addf %230, %224 : vector<8x20xf32>
    %232 = arith.negf %231 : vector<8x20xf32>
    %233 = math.exp %232 : vector<8x20xf32>
    %cst_76 = arith.constant 1.000000e+00 : f32
    %234 = vector.broadcast %cst_76 : f32 to vector<8x20xf32>
    %235 = arith.addf %234, %233 : vector<8x20xf32>
    %236 = arith.divf %234, %235 : vector<8x20xf32>
    %237 = vector.extract_strided_slice %236 {offsets = [0, 0], sizes = [8, 10], strides = [1, 1]} : vector<8x20xf32> to vector<8x10xf32>
    %238 = arith.index_cast %c4_i32 : i32 to index
    %c0_77 = arith.constant 0 : index
    %c0_78 = arith.constant 0 : index
    %239 = vector.load %arg16[%238, %c0_77, %c0_78] : memref<8x8x10xf32, #tpu.memory_space<vmem>>, vector<1x8x10xf32>
    %240 = vector.shape_cast %239 : vector<1x8x10xf32> to vector<8x10xf32>
    %241 = arith.mulf %237, %225 : vector<8x10xf32>
    %242 = arith.addf %240, %241 : vector<8x10xf32>
    %243 = math.tanh %242 : vector<8x10xf32>
    %244 = vector.extract_strided_slice %236 {offsets = [0, 10], sizes = [8, 10], strides = [1, 1]} : vector<8x20xf32> to vector<8x10xf32>
    %245 = arith.subf %199, %243 : vector<8x10xf32>
    %246 = arith.mulf %244, %245 : vector<8x10xf32>
    %247 = arith.addf %243, %246 : vector<8x10xf32>
    %cst_79 = arith.constant dense<0.000000e+00> : vector<8x30xf32>
    %248 = tpu.matmul %247, %21, %cst_79 {dimension_numbers = #tpu.dot_dimension_numbers<[1], [0], [0], [1], [0, 0, 1, 1], [], []>} : vector<8x10xf32>, vector<10x30xf32>, vector<8x30xf32> -> vector<8x30xf32>
    %249 = vector.extract_strided_slice %248 {offsets = [0, 0], sizes = [8, 20], strides = [1, 1]} : vector<8x30xf32> to vector<8x20xf32>
    %250 = arith.addf %249, %226 : vector<8x20xf32>
    %251 = arith.negf %250 : vector<8x20xf32>
    %252 = math.exp %251 : vector<8x20xf32>
    %cst_80 = arith.constant 1.000000e+00 : f32
    %253 = vector.broadcast %cst_80 : f32 to vector<8x20xf32>
    %254 = arith.addf %253, %252 : vector<8x20xf32>
    %255 = arith.divf %253, %254 : vector<8x20xf32>
    %256 = vector.extract_strided_slice %255 {offsets = [0, 0], sizes = [8, 10], strides = [1, 1]} : vector<8x20xf32> to vector<8x10xf32>
    %257 = vector.extract_strided_slice %248 {offsets = [0, 20], sizes = [8, 10], strides = [1, 1]} : vector<8x30xf32> to vector<8x10xf32>
    %258 = arith.addf %257, %24 : vector<8x10xf32>
    %259 = arith.mulf %256, %227 : vector<8x10xf32>
    %260 = arith.addf %258, %259 : vector<8x10xf32>
    %261 = math.tanh %260 : vector<8x10xf32>
    %262 = vector.extract_strided_slice %255 {offsets = [0, 10], sizes = [8, 10], strides = [1, 1]} : vector<8x20xf32> to vector<8x10xf32>
    %263 = arith.subf %217, %261 : vector<8x10xf32>
    %264 = arith.mulf %262, %263 : vector<8x10xf32>
    %265 = arith.addf %261, %264 : vector<8x10xf32>
    %266 = arith.index_cast %c4_i32 : i32 to index
    %c0_81 = arith.constant 0 : index
    %c0_82 = arith.constant 0 : index
    %267 = vector.load %arg11[%266, %c0_81, %c0_82] : memref<8x8x10xf32, #tpu.memory_space<vmem>>, vector<1x8x10xf32>
    %268 = vector.shape_cast %267 : vector<1x8x10xf32> to vector<8x10xf32>
    %269 = vector.shape_cast %265 : vector<8x10xf32> to vector<1x8x10xf32>
    tpu.vector_store %arg11[%266, %c0_81, %c0_82], %269 {strides = array<i32>} : memref<8x8x10xf32, #tpu.memory_space<vmem>>, vector<1x8x10xf32>,
    %c5_i32 = arith.constant 5 : i32
    %270 = tpu.concatenate %247, %265, %25 in 1 : vector<8x10xf32>, vector<8x10xf32>, vector<8x1xf32> -> vector<8x21xf32>
    %cst_83 = arith.constant dense<0.000000e+00> : vector<8x256xf32>
    %271 = tpu.matmul %270, %20, %cst_83 {dimension_numbers = #tpu.dot_dimension_numbers<[1], [0], [0], [1], [0, 0, 1, 1], [], []>} : vector<8x21xf32>, vector<21x256xf32>, vector<8x256xf32> -> vector<8x256xf32>
    %272 = vector.extract_strided_slice %271 {offsets = [0, 0], sizes = [8, 20], strides = [1, 1]} : vector<8x256xf32> to vector<8x20xf32>
    %273 = vector.extract_strided_slice %271 {offsets = [0, 20], sizes = [8, 10], strides = [1, 1]} : vector<8x256xf32> to vector<8x10xf32>
    %274 = vector.extract_strided_slice %271 {offsets = [0, 128], sizes = [8, 20], strides = [1, 1]} : vector<8x256xf32> to vector<8x20xf32>
    %275 = vector.extract_strided_slice %271 {offsets = [0, 148], sizes = [8, 10], strides = [1, 1]} : vector<8x256xf32> to vector<8x10xf32>
    %276 = arith.index_cast %c5_i32 : i32 to index
    %c0_84 = arith.constant 0 : index
    %c0_85 = arith.constant 0 : index
    %277 = vector.load %arg15[%276, %c0_84, %c0_85] : memref<8x8x20xf32, #tpu.memory_space<vmem>>, vector<1x8x20xf32>
    %278 = vector.shape_cast %277 : vector<1x8x20xf32> to vector<8x20xf32>
    %279 = arith.addf %278, %272 : vector<8x20xf32>
    %280 = arith.negf %279 : vector<8x20xf32>
    %281 = math.exp %280 : vector<8x20xf32>
    %cst_86 = arith.constant 1.000000e+00 : f32
    %282 = vector.broadcast %cst_86 : f32 to vector<8x20xf32>
    %283 = arith.addf %282, %281 : vector<8x20xf32>
    %284 = arith.divf %282, %283 : vector<8x20xf32>
    %285 = vector.extract_strided_slice %284 {offsets = [0, 0], sizes = [8, 10], strides = [1, 1]} : vector<8x20xf32> to vector<8x10xf32>
    %286 = arith.index_cast %c5_i32 : i32 to index
    %c0_87 = arith.constant 0 : index
    %c0_88 = arith.constant 0 : index
    %287 = vector.load %arg16[%286, %c0_87, %c0_88] : memref<8x8x10xf32, #tpu.memory_space<vmem>>, vector<1x8x10xf32>
    %288 = vector.shape_cast %287 : vector<1x8x10xf32> to vector<8x10xf32>
    %289 = arith.mulf %285, %273 : vector<8x10xf32>
    %290 = arith.addf %288, %289 : vector<8x10xf32>
    %291 = math.tanh %290 : vector<8x10xf32>
    %292 = vector.extract_strided_slice %284 {offsets = [0, 10], sizes = [8, 10], strides = [1, 1]} : vector<8x20xf32> to vector<8x10xf32>
    %293 = arith.subf %247, %291 : vector<8x10xf32>
    %294 = arith.mulf %292, %293 : vector<8x10xf32>
    %295 = arith.addf %291, %294 : vector<8x10xf32>
    %cst_89 = arith.constant dense<0.000000e+00> : vector<8x30xf32>
    %296 = tpu.matmul %295, %21, %cst_89 {dimension_numbers = #tpu.dot_dimension_numbers<[1], [0], [0], [1], [0, 0, 1, 1], [], []>} : vector<8x10xf32>, vector<10x30xf32>, vector<8x30xf32> -> vector<8x30xf32>
    %297 = vector.extract_strided_slice %296 {offsets = [0, 0], sizes = [8, 20], strides = [1, 1]} : vector<8x30xf32> to vector<8x20xf32>
    %298 = arith.addf %297, %274 : vector<8x20xf32>
    %299 = arith.negf %298 : vector<8x20xf32>
    %300 = math.exp %299 : vector<8x20xf32>
    %cst_90 = arith.constant 1.000000e+00 : f32
    %301 = vector.broadcast %cst_90 : f32 to vector<8x20xf32>
    %302 = arith.addf %301, %300 : vector<8x20xf32>
    %303 = arith.divf %301, %302 : vector<8x20xf32>
    %304 = vector.extract_strided_slice %303 {offsets = [0, 0], sizes = [8, 10], strides = [1, 1]} : vector<8x20xf32> to vector<8x10xf32>
    %305 = vector.extract_strided_slice %296 {offsets = [0, 20], sizes = [8, 10], strides = [1, 1]} : vector<8x30xf32> to vector<8x10xf32>
    %306 = arith.addf %305, %24 : vector<8x10xf32>
    %307 = arith.mulf %304, %275 : vector<8x10xf32>
    %308 = arith.addf %306, %307 : vector<8x10xf32>
    %309 = math.tanh %308 : vector<8x10xf32>
    %310 = vector.extract_strided_slice %303 {offsets = [0, 10], sizes = [8, 10], strides = [1, 1]} : vector<8x20xf32> to vector<8x10xf32>
    %311 = arith.subf %265, %309 : vector<8x10xf32>
    %312 = arith.mulf %310, %311 : vector<8x10xf32>
    %313 = arith.addf %309, %312 : vector<8x10xf32>
    %314 = arith.index_cast %c5_i32 : i32 to index
    %c0_91 = arith.constant 0 : index
    %c0_92 = arith.constant 0 : index
    %315 = vector.load %arg11[%314, %c0_91, %c0_92] : memref<8x8x10xf32, #tpu.memory_space<vmem>>, vector<1x8x10xf32>
    %316 = vector.shape_cast %315 : vector<1x8x10xf32> to vector<8x10xf32>
    %317 = vector.shape_cast %313 : vector<8x10xf32> to vector<1x8x10xf32>
    tpu.vector_store %arg11[%314, %c0_91, %c0_92], %317 {strides = array<i32>} : memref<8x8x10xf32, #tpu.memory_space<vmem>>, vector<1x8x10xf32>,
    %c6_i32 = arith.constant 6 : i32
    %318 = tpu.concatenate %295, %313, %25 in 1 : vector<8x10xf32>, vector<8x10xf32>, vector<8x1xf32> -> vector<8x21xf32>
    %cst_93 = arith.constant dense<0.000000e+00> : vector<8x256xf32>
    %319 = tpu.matmul %318, %20, %cst_93 {dimension_numbers = #tpu.dot_dimension_numbers<[1], [0], [0], [1], [0, 0, 1, 1], [], []>} : vector<8x21xf32>, vector<21x256xf32>, vector<8x256xf32> -> vector<8x256xf32>
    %320 = vector.extract_strided_slice %319 {offsets = [0, 0], sizes = [8, 20], strides = [1, 1]} : vector<8x256xf32> to vector<8x20xf32>
    %321 = vector.extract_strided_slice %319 {offsets = [0, 20], sizes = [8, 10], strides = [1, 1]} : vector<8x256xf32> to vector<8x10xf32>
    %322 = vector.extract_strided_slice %319 {offsets = [0, 128], sizes = [8, 20], strides = [1, 1]} : vector<8x256xf32> to vector<8x20xf32>
    %323 = vector.extract_strided_slice %319 {offsets = [0, 148], sizes = [8, 10], strides = [1, 1]} : vector<8x256xf32> to vector<8x10xf32>
    %324 = arith.index_cast %c6_i32 : i32 to index
    %c0_94 = arith.constant 0 : index
    %c0_95 = arith.constant 0 : index
    %325 = vector.load %arg15[%324, %c0_94, %c0_95] : memref<8x8x20xf32, #tpu.memory_space<vmem>>, vector<1x8x20xf32>
    %326 = vector.shape_cast %325 : vector<1x8x20xf32> to vector<8x20xf32>
    %327 = arith.addf %326, %320 : vector<8x20xf32>
    %328 = arith.negf %327 : vector<8x20xf32>
    %329 = math.exp %328 : vector<8x20xf32>
    %cst_96 = arith.constant 1.000000e+00 : f32
    %330 = vector.broadcast %cst_96 : f32 to vector<8x20xf32>
    %331 = arith.addf %330, %329 : vector<8x20xf32>
    %332 = arith.divf %330, %331 : vector<8x20xf32>
    %333 = vector.extract_strided_slice %332 {offsets = [0, 0], sizes = [8, 10], strides = [1, 1]} : vector<8x20xf32> to vector<8x10xf32>
    %334 = arith.index_cast %c6_i32 : i32 to index
    %c0_97 = arith.constant 0 : index
    %c0_98 = arith.constant 0 : index
    %335 = vector.load %arg16[%334, %c0_97, %c0_98] : memref<8x8x10xf32, #tpu.memory_space<vmem>>, vector<1x8x10xf32>
    %336 = vector.shape_cast %335 : vector<1x8x10xf32> to vector<8x10xf32>
    %337 = arith.mulf %333, %321 : vector<8x10xf32>
    %338 = arith.addf %336, %337 : vector<8x10xf32>
    %339 = math.tanh %338 : vector<8x10xf32>
    %340 = vector.extract_strided_slice %332 {offsets = [0, 10], sizes = [8, 10], strides = [1, 1]} : vector<8x20xf32> to vector<8x10xf32>
    %341 = arith.subf %295, %339 : vector<8x10xf32>
    %342 = arith.mulf %340, %341 : vector<8x10xf32>
    %343 = arith.addf %339, %342 : vector<8x10xf32>
    %cst_99 = arith.constant dense<0.000000e+00> : vector<8x30xf32>
    %344 = tpu.matmul %343, %21, %cst_99 {dimension_numbers = #tpu.dot_dimension_numbers<[1], [0], [0], [1], [0, 0, 1, 1], [], []>} : vector<8x10xf32>, vector<10x30xf32>, vector<8x30xf32> -> vector<8x30xf32>
    %345 = vector.extract_strided_slice %344 {offsets = [0, 0], sizes = [8, 20], strides = [1, 1]} : vector<8x30xf32> to vector<8x20xf32>
    %346 = arith.addf %345, %322 : vector<8x20xf32>
    %347 = arith.negf %346 : vector<8x20xf32>
    %348 = math.exp %347 : vector<8x20xf32>
    %cst_100 = arith.constant 1.000000e+00 : f32
    %349 = vector.broadcast %cst_100 : f32 to vector<8x20xf32>
    %350 = arith.addf %349, %348 : vector<8x20xf32>
    %351 = arith.divf %349, %350 : vector<8x20xf32>
    %352 = vector.extract_strided_slice %351 {offsets = [0, 0], sizes = [8, 10], strides = [1, 1]} : vector<8x20xf32> to vector<8x10xf32>
    %353 = vector.extract_strided_slice %344 {offsets = [0, 20], sizes = [8, 10], strides = [1, 1]} : vector<8x30xf32> to vector<8x10xf32>
    %354 = arith.addf %353, %24 : vector<8x10xf32>
    %355 = arith.mulf %352, %323 : vector<8x10xf32>
    %356 = arith.addf %354, %355 : vector<8x10xf32>
    %357 = math.tanh %356 : vector<8x10xf32>
    %358 = vector.extract_strided_slice %351 {offsets = [0, 10], sizes = [8, 10], strides = [1, 1]} : vector<8x20xf32> to vector<8x10xf32>
    %359 = arith.subf %313, %357 : vector<8x10xf32>
    %360 = arith.mulf %358, %359 : vector<8x10xf32>
    %361 = arith.addf %357, %360 : vector<8x10xf32>
    %362 = arith.index_cast %c6_i32 : i32 to index
    %c0_101 = arith.constant 0 : index
    %c0_102 = arith.constant 0 : index
    %363 = vector.load %arg11[%362, %c0_101, %c0_102] : memref<8x8x10xf32, #tpu.memory_space<vmem>>, vector<1x8x10xf32>
    %364 = vector.shape_cast %363 : vector<1x8x10xf32> to vector<8x10xf32>
    %365 = vector.shape_cast %361 : vector<8x10xf32> to vector<1x8x10xf32>
    tpu.vector_store %arg11[%362, %c0_101, %c0_102], %365 {strides = array<i32>} : memref<8x8x10xf32, #tpu.memory_space<vmem>>, vector<1x8x10xf32>,
    %c7_i32 = arith.constant 7 : i32
    %366 = tpu.concatenate %343, %361, %25 in 1 : vector<8x10xf32>, vector<8x10xf32>, vector<8x1xf32> -> vector<8x21xf32>
    %cst_103 = arith.constant dense<0.000000e+00> : vector<8x256xf32>
    %367 = tpu.matmul %366, %20, %cst_103 {dimension_numbers = #tpu.dot_dimension_numbers<[1], [0], [0], [1], [0, 0, 1, 1], [], []>} : vector<8x21xf32>, vector<21x256xf32>, vector<8x256xf32> -> vector<8x256xf32>
    %368 = vector.extract_strided_slice %367 {offsets = [0, 0], sizes = [8, 20], strides = [1, 1]} : vector<8x256xf32> to vector<8x20xf32>
    %369 = vector.extract_strided_slice %367 {offsets = [0, 20], sizes = [8, 10], strides = [1, 1]} : vector<8x256xf32> to vector<8x10xf32>
    %370 = vector.extract_strided_slice %367 {offsets = [0, 128], sizes = [8, 20], strides = [1, 1]} : vector<8x256xf32> to vector<8x20xf32>
    %371 = vector.extract_strided_slice %367 {offsets = [0, 148], sizes = [8, 10], strides = [1, 1]} : vector<8x256xf32> to vector<8x10xf32>
    %372 = arith.index_cast %c7_i32 : i32 to index
    %c0_104 = arith.constant 0 : index
    %c0_105 = arith.constant 0 : index
    %373 = vector.load %arg15[%372, %c0_104, %c0_105] : memref<8x8x20xf32, #tpu.memory_space<vmem>>, vector<1x8x20xf32>
    %374 = vector.shape_cast %373 : vector<1x8x20xf32> to vector<8x20xf32>
    %375 = arith.addf %374, %368 : vector<8x20xf32>
    %376 = arith.negf %375 : vector<8x20xf32>
    %377 = math.exp %376 : vector<8x20xf32>
    %cst_106 = arith.constant 1.000000e+00 : f32
    %378 = vector.broadcast %cst_106 : f32 to vector<8x20xf32>
    %379 = arith.addf %378, %377 : vector<8x20xf32>
    %380 = arith.divf %378, %379 : vector<8x20xf32>
    %381 = vector.extract_strided_slice %380 {offsets = [0, 0], sizes = [8, 10], strides = [1, 1]} : vector<8x20xf32> to vector<8x10xf32>
    %382 = arith.index_cast %c7_i32 : i32 to index
    %c0_107 = arith.constant 0 : index
    %c0_108 = arith.constant 0 : index
    %383 = vector.load %arg16[%382, %c0_107, %c0_108] : memref<8x8x10xf32, #tpu.memory_space<vmem>>, vector<1x8x10xf32>
    %384 = vector.shape_cast %383 : vector<1x8x10xf32> to vector<8x10xf32>
    %385 = arith.mulf %381, %369 : vector<8x10xf32>
    %386 = arith.addf %384, %385 : vector<8x10xf32>
    %387 = math.tanh %386 : vector<8x10xf32>
    %388 = vector.extract_strided_slice %380 {offsets = [0, 10], sizes = [8, 10], strides = [1, 1]} : vector<8x20xf32> to vector<8x10xf32>
    %389 = arith.subf %343, %387 : vector<8x10xf32>
    %390 = arith.mulf %388, %389 : vector<8x10xf32>
    %391 = arith.addf %387, %390 : vector<8x10xf32>
    %cst_109 = arith.constant dense<0.000000e+00> : vector<8x30xf32>
    %392 = tpu.matmul %391, %21, %cst_109 {dimension_numbers = #tpu.dot_dimension_numbers<[1], [0], [0], [1], [0, 0, 1, 1], [], []>} : vector<8x10xf32>, vector<10x30xf32>, vector<8x30xf32> -> vector<8x30xf32>
    %393 = vector.extract_strided_slice %392 {offsets = [0, 0], sizes = [8, 20], strides = [1, 1]} : vector<8x30xf32> to vector<8x20xf32>
    %394 = arith.addf %393, %370 : vector<8x20xf32>
    %395 = arith.negf %394 : vector<8x20xf32>
    %396 = math.exp %395 : vector<8x20xf32>
    %cst_110 = arith.constant 1.000000e+00 : f32
    %397 = vector.broadcast %cst_110 : f32 to vector<8x20xf32>
    %398 = arith.addf %397, %396 : vector<8x20xf32>
    %399 = arith.divf %397, %398 : vector<8x20xf32>
    %400 = vector.extract_strided_slice %399 {offsets = [0, 0], sizes = [8, 10], strides = [1, 1]} : vector<8x20xf32> to vector<8x10xf32>
    %401 = vector.extract_strided_slice %392 {offsets = [0, 20], sizes = [8, 10], strides = [1, 1]} : vector<8x30xf32> to vector<8x10xf32>
    %402 = arith.addf %401, %24 : vector<8x10xf32>
    %403 = arith.mulf %400, %371 : vector<8x10xf32>
    %404 = arith.addf %402, %403 : vector<8x10xf32>
    %405 = math.tanh %404 : vector<8x10xf32>
    %406 = vector.extract_strided_slice %399 {offsets = [0, 10], sizes = [8, 10], strides = [1, 1]} : vector<8x20xf32> to vector<8x10xf32>
    %407 = arith.subf %361, %405 : vector<8x10xf32>
    %408 = arith.mulf %406, %407 : vector<8x10xf32>
    %409 = arith.addf %405, %408 : vector<8x10xf32>
    %410 = arith.index_cast %c7_i32 : i32 to index
    %c0_111 = arith.constant 0 : index
    %c0_112 = arith.constant 0 : index
    %411 = vector.load %arg11[%410, %c0_111, %c0_112] : memref<8x8x10xf32, #tpu.memory_space<vmem>>, vector<1x8x10xf32>
    %412 = vector.shape_cast %411 : vector<1x8x10xf32> to vector<8x10xf32>
    %413 = vector.shape_cast %409 : vector<8x10xf32> to vector<1x8x10xf32>
    tpu.vector_store %arg11[%410, %c0_111, %c0_112], %413 {strides = array<i32>} : memref<8x8x10xf32, #tpu.memory_space<vmem>>, vector<1x8x10xf32>,
    %c8_i32 = arith.constant 8 : i32
    %c0_113 = arith.constant 0 : index
    %c0_114 = arith.constant 0 : index
    %c0_115 = arith.constant 0 : index
    %414 = vector.load %arg14[%c0_113, %c0_114, %c0_115] : memref<2x8x10xf32, #tpu.memory_space<vmem>>, vector<1x8x10xf32>
    %415 = vector.shape_cast %414 : vector<1x8x10xf32> to vector<8x10xf32>
    %416 = vector.shape_cast %391 : vector<8x10xf32> to vector<1x8x10xf32>
    tpu.vector_store %arg14[%c0_113, %c0_114, %c0_115], %416 {strides = array<i32>} : memref<2x8x10xf32, #tpu.memory_space<vmem>>, vector<1x8x10xf32>,
    %c1_116 = arith.constant 1 : index
    %c0_117 = arith.constant 0 : index
    %c0_118 = arith.constant 0 : index
    %417 = vector.load %arg14[%c1_116, %c0_117, %c0_118] : memref<2x8x10xf32, #tpu.memory_space<vmem>>, vector<1x8x10xf32>
    %418 = vector.shape_cast %417 : vector<1x8x10xf32> to vector<8x10xf32>
    %419 = vector.shape_cast %409 : vector<8x10xf32> to vector<1x8x10xf32>
    tpu.vector_store %arg14[%c1_116, %c0_117, %c0_118], %419 {strides = array<i32>} : memref<2x8x10xf32, #tpu.memory_space<vmem>>, vector<1x8x10xf32>,
    %c0_119 = arith.constant 0 : index
    %c0_120 = arith.constant 0 : index
    %c0_121 = arith.constant 0 : index
    %420 = vector.load %arg12[%c0_119, %c0_120, %c0_121] : memref<2x8x10xf32, #tpu.memory_space<vmem>>, vector<1x8x10xf32>
    %421 = vector.shape_cast %420 : vector<1x8x10xf32> to vector<8x10xf32>
    %422 = vector.shape_cast %391 : vector<8x10xf32> to vector<1x8x10xf32>
    tpu.vector_store %arg12[%c0_119, %c0_120, %c0_121], %422 {strides = array<i32>} : memref<2x8x10xf32, #tpu.memory_space<vmem>>, vector<1x8x10xf32>,
    %c1_122 = arith.constant 1 : index
    %c0_123 = arith.constant 0 : index
    %c0_124 = arith.constant 0 : index
    %423 = vector.load %arg12[%c1_122, %c0_123, %c0_124] : memref<2x8x10xf32, #tpu.memory_space<vmem>>, vector<1x8x10xf32>
    %424 = vector.shape_cast %423 : vector<1x8x10xf32> to vector<8x10xf32>
    %425 = vector.shape_cast %409 : vector<8x10xf32> to vector<1x8x10xf32>
    tpu.vector_store %arg12[%c1_122, %c0_123, %c0_124], %425 {strides = array<i32>} : memref<2x8x10xf32, #tpu.memory_space<vmem>>, vector<1x8x10xf32>,
    %c0_125 = arith.constant 0 : index
    %c0_126 = arith.constant 0 : index
    %c0_127 = arith.constant 0 : index
    %426 = vector.load %arg11[%c0_125, %c0_126, %c0_127] : memref<8x8x10xf32, #tpu.memory_space<vmem>>, vector<8x8x10xf32>
    %c0_128 = arith.constant 0 : index
    %c0_129 = arith.constant 0 : index
    %c0_130 = arith.constant 0 : index
    %427 = vector.load %arg9[%c0_128, %c0_129, %c0_130] : memref<1x1x10xf32, #tpu.memory_space<vmem>>, vector<1x1x10xf32>
    %428 = vector.broadcast %427 : vector<1x1x10xf32> to vector<8x8x10xf32>
    %429 = arith.mulf %426, %428 : vector<8x8x10xf32>
    %cst_131 = arith.constant dense<0.000000e+00> : vector<8x8xf32>
    %430 = vector.multi_reduction <add>, %429, %cst_131 [2] : vector<8x8x10xf32> to vector<8x8xf32>
    %c0_132 = arith.constant 0 : index
    %c0_133 = arith.constant 0 : index
    %431 = vector.load %arg10[%c0_132, %c0_133] : memref<1x1xf32, #tpu.memory_space<vmem>>, vector<1x1xf32>
    %432 = vector.broadcast %431 : vector<1x1xf32> to vector<8x8xf32>
    %433 = arith.addf %430, %432 : vector<8x8xf32>
    %c0_134 = arith.constant 0 : index
    %c0_135 = arith.constant 0 : index
    %434 = vector.load %arg13[%c0_134, %c0_135] : memref<8x8xf32, #tpu.memory_space<vmem>>, vector<8x8xf32>
    tpu.vector_store %arg13[%c0_134, %c0_135], %433 {strides = array<i32>} : memref<8x8xf32, #tpu.memory_space<vmem>>, vector<8x8xf32>,
    return
  }
  func.func @transform_0(%arg0: i32) -> (i32, i32, i32) {
    %c0_i32 = arith.constant 0 : i32
    %c0_i32_0 = arith.constant 0 : i32
    %c0_i32_1 = arith.constant 0 : i32
    return %arg0, %c0_i32, %c0_i32_0 : i32, i32, i32
  }
  func.func @transform_1(%arg0: i32) -> (i32, i32, i32) {
    %c0_i32 = arith.constant 0 : i32
    %c0_i32_0 = arith.constant 0 : i32
    %c0_i32_1 = arith.constant 0 : i32
    %c0_i32_2 = arith.constant 0 : i32
    return %c0_i32, %c0_i32_0, %c0_i32_1 : i32, i32, i32
  }
  func.func @transform_2(%arg0: i32) -> (i32, i32, i32) {
    %c0_i32 = arith.constant 0 : i32
    %c0_i32_0 = arith.constant 0 : i32
    %c0_i32_1 = arith.constant 0 : i32
    %c0_i32_2 = arith.constant 0 : i32
    return %c0_i32, %c0_i32_0, %c0_i32_1 : i32, i32, i32
  }
  func.func @transform_3(%arg0: i32) -> (i32, i32, i32) {
    %c0_i32 = arith.constant 0 : i32
    %c0_i32_0 = arith.constant 0 : i32
    %c0_i32_1 = arith.constant 0 : i32
    %c0_i32_2 = arith.constant 0 : i32
    return %c0_i32, %c0_i32_0, %c0_i32_1 : i32, i32, i32
  }
  func.func @transform_4(%arg0: i32) -> (i32, i32, i32) {
    %c0_i32 = arith.constant 0 : i32
    %c0_i32_0 = arith.constant 0 : i32
    %c0_i32_1 = arith.constant 0 : i32
    %c0_i32_2 = arith.constant 0 : i32
    return %c0_i32, %c0_i32_0, %c0_i32_1 : i32, i32, i32
  }
  func.func @transform_5(%arg0: i32) -> (i32, i32) {
    %c0_i32 = arith.constant 0 : i32
    %c0_i32_0 = arith.constant 0 : i32
    %c0_i32_1 = arith.constant 0 : i32
    return %c0_i32, %c0_i32_0 : i32, i32
  }
  func.func @transform_6(%arg0: i32) -> (i32, i32) {
    %c0_i32 = arith.constant 0 : i32
    %c0_i32_0 = arith.constant 0 : i32
    %c0_i32_1 = arith.constant 0 : i32
    return %c0_i32, %c0_i32_0 : i32, i32
  }
  func.func @transform_7(%arg0: i32) -> (i32, i32) {
    %c0_i32 = arith.constant 0 : i32
    %c0_i32_0 = arith.constant 0 : i32
    %c0_i32_1 = arith.constant 0 : i32
    return %c0_i32, %c0_i32_0 : i32, i32
  }
  func.func @transform_8(%arg0: i32) -> (i32, i32, i32) {
    %c0_i32 = arith.constant 0 : i32
    %c0_i32_0 = arith.constant 0 : i32
    %c0_i32_1 = arith.constant 0 : i32
    %c0_i32_2 = arith.constant 0 : i32
    return %c0_i32, %c0_i32_0, %c0_i32_1 : i32, i32, i32
  }
  func.func @transform_9(%arg0: i32) -> (i32, i32) {
    %c0_i32 = arith.constant 0 : i32
    %c0_i32_0 = arith.constant 0 : i32
    %c0_i32_1 = arith.constant 0 : i32
    return %c0_i32, %c0_i32_0 : i32, i32
  }
  func.func @transform_10(%arg0: i32) -> (i32, i32, i32) {
    %c0_i32 = arith.constant 0 : i32
    %c0_i32_0 = arith.constant 0 : i32
    %c0_i32_1 = arith.constant 0 : i32
    return %arg0, %c0_i32, %c0_i32_0 : i32, i32, i32
  }
  func.func @transform_11(%arg0: i32) -> (i32, i32, i32) {
    %c0_i32 = arith.constant 0 : i32
    %c0_i32_0 = arith.constant 0 : i32
    %c0_i32_1 = arith.constant 0 : i32
    %c0_i32_2 = arith.constant 0 : i32
    return %c0_i32, %c0_i32_0, %c0_i32_1 : i32, i32, i32
  }
  func.func @transform_12(%arg0: i32) -> (i32, i32) {
    %c0_i32 = arith.constant 0 : i32
    %c0_i32_0 = arith.constant 0 : i32
    return %arg0, %c0_i32 : i32, i32
  }
}

</mosaic_0001>

<bundles_post_ra>
// kernel: tpu_custom_call.1
= control target key start
LH: loop header
LB: loop body
LE: loop exit
PB: predicated region body
PF: predicated region fallthrough
CT: control target
= control target key end

     0   :  { %s3102_s0 = inlined_call_operand.vmem [shape: f32[8,8,1], index: 0, kind: input, shape index: {}]   ;;  %s3103_s1 = inlined_call_operand.vmem [shape: f32[1,1,20], index: 1, kind: input, shape index: {}]   ;;  %s3104_s2 = inlined_call_operand.vmem [shape: f32[1,1,10], index: 2, kind: input, shape index: {}]   ;;  %s3105_s3 = inlined_call_operand.vmem [shape: f32[1,1,20], index: 3, kind: input, shape index: {}]   ;;  %s3106_s4 = inlined_call_operand.vmem [shape: f32[1,1,10], index: 4, kind: input, shape index: {}]   ;;  %s3107_s5 = inlined_call_operand.vmem [shape: f32[21,256], index: 5, kind: input, shape index: {}]   ;;  %s3108_s6 = inlined_call_operand.vmem [shape: f32[10,30], index: 6, kind: input, shape index: {}]   ;;  %s3109_s7 = inlined_call_operand.vmem [shape: f32[1,10], index: 7, kind: input, shape index: {}]   ;;  %s3110_s8 = inlined_call_operand.vmem [shape: f32[1,1,10], index: 8, kind: input, shape index: {}]   ;;  %s3111_s9 = inlined_call_operand.<no memory space> [shape: f32[1,1], index: 9, kind: input, shape index: {}]   ;;  %s3112_s10 = inlined_call_operand.hbm [shape: f32[8,8,10], index: 10, kind: output, shape index: {0}]   ;;  %s3113_s11 = inlined_call_operand.hbm [shape: f32[2,8,10], index: 11, kind: output, shape index: {1}]   ;;  %s3114_s12 = inlined_call_operand.hbm [shape: f32[8,8], index: 12, kind: output, shape index: {2}]  }
   0x1   :  { %v18_v0 = vstv %s3111_s9 }
   0x2   :  { %19 = vst [vmem:[#allocation5] sm:$0x1] %v18_v0 }
   0x3   :  { %20 = vsyncpa [#allocation7], 0  ;;  %vm46_vm0 = vcmask 80896   ;;  %v176_v1 = vld [vmem:[%s3107_s5 + $0x8] sm:$0xff]  ;;  %v178_v2 = vld [vmem:[%s3107_s5 + $0x18] sm:$0xff]  ;;  %v2513_v4 = vmov 0.0  }
   0x4   :  { %v175_v3 = vld [vmem:[%s3107_s5] sm:$0xff]  ;;  %48 = vst.msk [vmem:[#allocation2 + $0x8] sm:$0xff] %vm46_vm0, %v2513_v4  ;;  %47 = vst.msk [vmem:[#allocation2] sm:$0xff] %vm46_vm0, %v2513_v4  ;;  %v2608_v5 = vpack.c.bf16 %v178_v2, %v176_v1  ;;  %v177_v6 = vld [vmem:[%s3107_s5 + $0x10] sm:$0xff]  ;;  %273 = vmatprep.mubr.f32.mxu0 %v2513_v4  ;;  %vm202_vm1 = vcmask 1044480   ;;  %v2514_v9 = vmov 0  }
   0x5   :  { %v2614_v7 = vpack.c.bf16 %v177_v6, %v175_v3  ;;  %v2619_v8 = vld [vmem:[%s3107_s5 + $0x28] sm:$0x1f]  ;;  %2340 = vset.pattern.permute.xlu0 %v2514_v9  ;;  %2341 = vset.pattern.permute.xlu1 %v2514_v9 }
   0x6   :  { %2263 = vmatprep.subr.bf16.mxu0 %v2608_v5 }
   0x7   :  { %2265 = vmatpush1.bf16.msra.mxu0 %v2614_v7 }
   0x8   :  { %21 = vsyncpa [#allocation9], 0  ;;  %2124 = vmatprep.subr.msk.mxu0 %vm202_vm1, %v2619_v8  ;;  %v2628_v10 = vld [vmem:[%s3107_s5 + $0x20] sm:$0x1f]  ;;  %s2515_s16 = smov 10   ;;  %vm127_vm2 = vcmask 162816  }
   0x9   :  { %v49_v12 = vld [vmem:[%s3102_s0] sm:$0xff]  ;;  %vm198_vm3 = vcmask 171008   ;;  %s2516_s27 = smov 108   ;;  %v182_v39 = vld [vmem:[%s3108_s6 + $0x8] sm:$0x3]  ;;  %vm310_vm4 = vcmask 1041408  }
   0xa   :  { %v2645_v17 = vld [vmem:[%s3103_s1] ss:$0 sm:$0xff]  ;;  %v2517_v40 = vmov 0.0|0.0   ;;  %vm2518_vm5 = vmmov 1   ;;  %vm2519_vm7 = vmmov 0   ;;  %s2521_s15 = smov 20  }
   0xb   :  { %v2630_v11 = vld [vmem:[#allocation2 + $0x8] sm:$0xff]  ;;  %2125 = vmatpush1.msk.msra.mxu0 %vm202_vm1, %v2628_v10  ;;  %v189_v13 = vld [vmem:[#allocation2] sm:$0xff]  ;;  %2266 = vmatprep.subr.bf16.mxu1 %v2517_v40  ;;  %vm2679_vm6 = vmpackc.low %vm310_vm4, %vm2518_vm5 }
   0xc   :  { %193 = vrot.lane.b32.xlu0 %v2630_v11, %s2515_s16  ;;  %v2650_v18 = vld [vmem:[%s3104_s2] ss:$0 sm:$0xff]  ;;  %2274 = vmatprep.subr.bf16.mxu0 %v2517_v40  ;;  %v50_v6 = vld [vmem:[%s3102_s0 + $0x8] sm:$0xff] }
   0xd   :  { %v2655_v19 = vld [vmem:[%s3105_s3] ss:$0 sm:$0xff]  ;;  %2210 = vmatprep.mubr.msk.f32.mxu1 %vm2519_vm7, %v2513_v4 }
   0xe   :  { %v2660_v20 = vld [vmem:[%s3106_s4] ss:$0 sm:$0xff] }
   0xf   :  { %v181_v38 = vld [vmem:[%s3108_s6] sm:$0xff]  ;;  %s2520_s6 = smov 118  }
  0x10   :  { %60 = vperm.xlu0 %2340, %v49_v12   ;;  %v2677_v41 = vpack.c.bf16 %v182_v39, %v181_v38  ;;  %v2123_v47 = vld [vmem:[%s3109_s7] ss:$0 sm:$0xff] }
  0x12   :  { %2269 = vmatpush3.bf16.msk.msra.mxu1 %vm2679_vm6, %v2677_v41 }
  0x13   :  { %2271 = vmatprep.subr.bf16.mxu1 %v2608_v5 }
  0x7e   :  { %v194_v14 = vpop.permute.xlu0 %193 }
  0x7f   :  { %v196_v15 = vsel %vm46_vm0, %v189_v13, %v194_v14 }
  0x80   :  { %v197_v16 = vsel %vm127_vm2, %v196_v15, 1.0 }
  0x81   :  { %2126 = vmatmul.mubr.msk.f32.vlgmr.msra.gmra.mrb[0].mxu0 %vm198_vm3, %v197_v16 }
  0x82   :  { %2277 = vmatpush3.bf16.msk.msra.mxu0 %vm2679_vm6, %v2677_v41  ;;  %2217 = vmatprep.mubr.msk.f32.mxu0 %vm2519_vm7, %v2513_v4 }
  0x83   :  { %2279 = vmatprep.subr.bf16.mxu0 %v2608_v5 }
  0x8f   :  { %v61_v21 = vpop.permute.xlu0 %60 }
  0x90   :  { %v104_v22 = vmul.f32 %v2645_v17, %v61_v21  ;;  %v143_v23 = vmul.f32 %v2650_v18, %v61_v21 }
  0x92   :  { %v119_v24 = vadd.f32 %v2655_v19, %v104_v22  ;;  %v158_v25 = vadd.f32 %v2660_v20, %v143_v23 }
  0x94   :  { %128 = vst.msk [vmem:[#allocation3] sm:$0xff] %vm127_vm2, %v119_v24 }
  0x95   :  { %167 = vst.msk [vmem:[#allocation4] sm:$0xff] %vm46_vm0, %v158_v25 }
  0x9b   :  { %v280_v28 = vld [vmem:[#allocation3] sm:$0xff] }
  0x9c   :  { %v288_v36 = vld [vmem:[#allocation4] sm:$0xff] }
 0x154   :  { %v275_v26 = vpop.f32.mrb[0].mxu0 }
 0x155   :  { %290 = vrot.lane.b32.xlu1 %v275_v26, %s2516_s27  ;;  %v277_v27 = vpop.f32.mrb[1].mxu0  ;;  %v281_v29 = vadd.f32 %v280_v28, %v275_v26 }
 0x156   :  { %396 = vrot.lane.b32.xlu0 %v277_v27, %s2516_s27 }
 0x157   :  { %v2127_v30 = vmul.f32 -1.442695, %v281_v29 }
 0x159   :  { %2342 = vpow2.f32 %v2127_v30 }
 0x163   :  { %v2343_v31 = vpop.eup %2342 }
 0x164   :  { %v285_v32 = vadd.f32 1.0, %v2343_v31 }
 0x166   :  { %2344 = vrcp.f32 %v285_v32 }
 0x170   :  { %v2345_v33 = vpop.eup %2344 }
 0x1c7   :  { %v291_v34 = vpop.permute.xlu1 %290 }
 0x1c8   :  { %v293_v35 = vmul.f32 %v2345_v33, %v291_v34  ;;  %v397_v57 = vpop.permute.xlu0 %396 }
 0x1ca   :  { %v294_v37 = vadd.f32 %v293_v35, %v288_v36 }
 0x1cc   :  { %2346 = vtanh.f32 %v294_v37 }
 0x1d6   :  { %v2347_v43 = vpop.eup %2346 }
 0x1d7   :  { %v296_v44 = vsub.f32 %v189_v13, %v2347_v43 }
 0x1d9   :  { %298 = vrot.lane.b32.xlu1 %v296_v44, %s2515_s16 }
 0x24b   :  { %v299_v45 = vpop.permute.xlu1 %298 }
 0x24c   :  { %v301_v46 = vmul.f32 %v2345_v33, %v299_v45 }
 0x24e   :  { %303 = vrot.lane.b32.xlu1 %v301_v46, %s2520_s6 }
 0x252   :  { %391 = vrot.lane.b32.xlu1 %v2123_v47, %s2521_s15 }
 0x2c0   :  { %v304_v48 = vpop.permute.xlu1 %303 }
 0x2c1   :  { %v2702_v49 = vadd.f32 %v2347_v43, %v304_v48 }
 0x2c3   :  { %2211 = vmatmul.mubr.msk.f32.vlgmr.msra.gmra.mrb[0].mxu1 %vm46_vm0, %v2702_v49 }
 0x2c4   :  { %2273 = vmatpush1.bf16.msra.mxu1 %v2614_v7  ;;  %498 = vmatprep.mubr.f32.mxu1 %v2513_v4  ;;  %v2714_v59 = vpop.permute.xlu1 %391 }
 0x2c5   :  { %2131 = vmatprep.subr.msk.mxu1 %vm202_vm1, %v2619_v8 }
 0x2c8   :  { %2132 = vmatpush1.msk.msra.mxu1 %vm202_vm1, %v2628_v10 }
 0x2c9   :  { %2282 = vmatprep.subr.bf16.mxu1 %v2517_v40 }
 0x396   :  { %v380_v50 = vpop.f32.mrb[0].mxu1 }
 0x397   :  { %v384_v51 = vadd.f32 %v380_v50, %v277_v27  ;;  %v2212_v52 = vpop.f32.mrb[1].mxu1  ;;  %v394_v60 = vadd.f32 %v2714_v59, %v380_v50 }
 0x399   :  { %v2130_v53 = vmul.f32 -1.442695, %v384_v51 }
 0x39b   :  { %2348 = vpow2.f32 %v2130_v53 }
 0x3a5   :  { %v2349_v54 = vpop.eup %2348 }
 0x3a6   :  { %v388_v55 = vadd.f32 1.0, %v2349_v54 }
 0x3a8   :  { %2350 = vrcp.f32 %v388_v55 }
 0x3b2   :  { %v2351_v56 = vpop.eup %2350 }
 0x3b3   :  { %v399_v58 = vmul.f32 %v2351_v56, %v397_v57 }
 0x3b5   :  { %401 = vrot.lane.b32.xlu0 %v399_v58, %s2521_s15 }
 0x427   :  { %v402_v61 = vpop.permute.xlu0 %401 }
 0x428   :  { %v404_v62 = vadd.f32 %v402_v61, %v394_v60 }
 0x42a   :  { %2352 = vtanh.f32 %v404_v62  ;;  %v51_v62 = vld [vmem:[%s3102_s0 + $0x10] sm:$0xff] }
 0x434   :  { %v2353_v63 = vpop.eup %2352 }
 0x435   :  { %407 = vrot.lane.b32.xlu1 %v2353_v63, %s2516_s27 }
 0x4a7   :  { %v408_v0 = vpop.permute.xlu1 %407 }
 0x4a8   :  { %v410_v1 = vsub.f32 %v2630_v11, %v408_v0 }
 0x4aa   :  { %412 = vrot.lane.b32.xlu0 %v410_v1, %s2515_s16 }
 0x51c   :  { %v413_v2 = vpop.permute.xlu0 %412 }
 0x51d   :  { %v415_v3 = vmul.f32 %v2351_v56, %v413_v2 }
 0x51f   :  { %417 = vrot.lane.b32.xlu1 %v415_v3, %s2515_s16 }
 0x523   :  { %65 = vperm.xlu1 %2341, %v50_v6  }
 0x591   :  { %v418_v9 = vpop.permute.xlu1 %417 }
 0x592   :  { %v2724_v12 = vadd.f32 %v2353_v63, %v418_v9 }
 0x594   :  { %426 = vrot.lane.b32.xlu0 %v2724_v12, %s2520_s6 }
 0x5a2   :  { %v66_v15 = vpop.permute.xlu1 %65 }
 0x5a3   :  { %v105_v16 = vmul.f32 %v2645_v17, %v66_v15  ;;  %v144_v21 = vmul.f32 %v2650_v18, %v66_v15 }
 0x5a5   :  { %v120_v22 = vadd.f32 %v2655_v19, %v105_v16  ;;  %v159_v23 = vadd.f32 %v2660_v20, %v144_v21 }
 0x5a7   :  { %129 = vst.msk [vmem:[#allocation3 + $0x8] sm:$0xff] %vm127_vm2, %v120_v22 }
 0x5a8   :  { %168 = vst.msk [vmem:[#allocation4 + $0x8] sm:$0xff] %vm46_vm0, %v159_v23 }
 0x5ae   :  { %v506_v26 = vld [vmem:[#allocation3 + $0x8] sm:$0xff] }
 0x5af   :  { %v515_v34 = vld [vmem:[#allocation4 + $0x8] sm:$0xff] }
 0x606   :  { %v427_v13 = vpop.permute.xlu0 %426 }
 0x607   :  { %v429_v11 = vsel %vm46_vm0, %v2702_v49, %v427_v13 }
 0x608   :  { %v430_v14 = vsel %vm127_vm2, %v429_v11, 1.0 }
 0x609   :  { %2133 = vmatmul.mubr.msk.f32.vlgmr.msra.gmra.mrb[2].mxu1 %vm198_vm3, %v430_v14 }
 0x60a   :  { %2285 = vmatpush3.bf16.msk.msra.mxu1 %vm2679_vm6, %v2677_v41  ;;  %2224 = vmatprep.mubr.msk.f32.mxu1 %vm2519_vm7, %v2513_v4 }
 0x60b   :  { %2287 = vmatprep.subr.bf16.mxu1 %v2608_v5 }
 0x6dc   :  { %v500_v24 = vpop.f32.mrb[2].mxu1 }
 0x6dd   :  { %517 = vrot.lane.b32.xlu0 %v500_v24, %s2516_s27  ;;  %v502_v25 = vpop.f32.mrb[3].mxu1  ;;  %v507_v27 = vadd.f32 %v506_v26, %v500_v24 }
 0x6df   :  { %v2134_v28 = vmul.f32 -1.442695, %v507_v27 }
 0x6e1   :  { %2354 = vpow2.f32 %v2134_v28 }
 0x6eb   :  { %v2355_v29 = vpop.eup %2354 }
 0x6ec   :  { %v511_v30 = vadd.f32 1.0, %v2355_v29 }
 0x6ee   :  { %2356 = vrcp.f32 %v511_v30 }
 0x6f8   :  { %v2357_v31 = vpop.eup %2356 }
 0x74f   :  { %v518_v32 = vpop.permute.xlu0 %517 }
 0x750   :  { %v520_v33 = vmul.f32 %v2357_v31, %v518_v32 }
 0x752   :  { %v521_v35 = vadd.f32 %v520_v33, %v515_v34 }
 0x754   :  { %2358 = vtanh.f32 %v521_v35 }
 0x75e   :  { %v2359_v36 = vpop.eup %2358 }
 0x75f   :  { %v523_v37 = vsub.f32 %v2702_v49, %v2359_v36 }
 0x761   :  { %525 = vrot.lane.b32.xlu1 %v523_v37, %s2515_s16 }
 0x765   :  { %616 = vrot.lane.b32.xlu1 %v502_v25, %s2516_s27 }
 0x7d3   :  { %v526_v38 = vpop.permute.xlu1 %525 }
 0x7d4   :  { %v528_v39 = vmul.f32 %v2357_v31, %v526_v38 }
 0x7d6   :  { %530 = vrot.lane.b32.xlu0 %v528_v39, %s2520_s6 }
 0x7d7   :  { %v617_v52 = vpop.permute.xlu1 %616 }
 0x848   :  { %v531_v43 = vpop.permute.xlu0 %530 }
 0x849   :  { %v2749_v44 = vadd.f32 %v2359_v36, %v531_v43 }
 0x84b   :  { %2218 = vmatmul.mubr.msk.f32.vlgmr.msra.gmra.mrb[2].mxu0 %vm46_vm0, %v2749_v44 }
 0x84c   :  { %2281 = vmatpush1.bf16.msra.mxu0 %v2614_v7  ;;  %715 = vmatprep.mubr.f32.mxu0 %v2513_v4 }
 0x84d   :  { %2138 = vmatprep.subr.msk.mxu0 %vm202_vm1, %v2619_v8 }
 0x850   :  { %2139 = vmatpush1.msk.msra.mxu0 %vm202_vm1, %v2628_v10 }
 0x851   :  { %2290 = vmatprep.subr.bf16.mxu0 %v2517_v40 }
 0x91e   :  { %v603_v45 = vpop.f32.mrb[2].mxu0 }
 0x91f   :  { %v607_v46 = vadd.f32 %v603_v45, %v502_v25  ;;  %v2219_v47 = vpop.f32.mrb[3].mxu0  ;;  %v614_v54 = vadd.f32 %v603_v45, %v2714_v59 }
 0x921   :  { %v2137_v48 = vmul.f32 -1.442695, %v607_v46 }
 0x923   :  { %2360 = vpow2.f32 %v2137_v48 }
 0x92d   :  { %v2361_v49 = vpop.eup %2360 }
 0x92e   :  { %v611_v50 = vadd.f32 1.0, %v2361_v49 }
 0x930   :  { %2362 = vrcp.f32 %v611_v50 }
 0x93a   :  { %v2363_v51 = vpop.eup %2362 }
 0x93b   :  { %v619_v53 = vmul.f32 %v2363_v51, %v617_v52 }
 0x93d   :  { %621 = vrot.lane.b32.xlu0 %v619_v53, %s2521_s15 }
 0x9af   :  { %v622_v55 = vpop.permute.xlu0 %621 }
 0x9b0   :  { %v624_v56 = vadd.f32 %v622_v55, %v614_v54 }
 0x9b2   :  { %2364 = vtanh.f32 %v624_v56  ;;  %v52_v56 = vld [vmem:[%s3102_s0 + $0x18] sm:$0xff] }
 0x9bc   :  { %v2365_v57 = vpop.eup %2364 }
 0x9bd   :  { %v626_v58 = vsub.f32 %v2724_v12, %v2365_v57 }
 0x9bf   :  { %628 = vrot.lane.b32.xlu1 %v626_v58, %s2520_s6 }
 0xa31   :  { %v629_v60 = vpop.permute.xlu1 %628 }
 0xa32   :  { %v631_v61 = vmul.f32 %v2363_v51, %v629_v60 }
 0xa34   :  { %633 = vrot.lane.b32.xlu0 %v631_v61, %s2515_s16 }
 0xa38   :  { %70 = vperm.xlu0 %2340, %v51_v62  }
 0xaa6   :  { %v634_v63 = vpop.permute.xlu0 %633 }
 0xaa7   :  { %v2768_v0 = vadd.f32 %v2365_v57, %v634_v63 }
 0xaa9   :  { %643 = vrot.lane.b32.xlu1 %v2768_v0, %s2520_s6 }
 0xab7   :  { %v71_v1 = vpop.permute.xlu0 %70 }
 0xab8   :  { %v106_v2 = vmul.f32 %v2645_v17, %v71_v1  ;;  %v145_v3 = vmul.f32 %v2650_v18, %v71_v1 }
 0xaba   :  { %v121_v6 = vadd.f32 %v2655_v19, %v106_v2  ;;  %v160_v9 = vadd.f32 %v2660_v20, %v145_v3 }
 0xabc   :  { %130 = vst.msk [vmem:[#allocation3 + $0x10] sm:$0xff] %vm127_vm2, %v121_v6 }
 0xabd   :  { %169 = vst.msk [vmem:[#allocation4 + $0x10] sm:$0xff] %vm46_vm0, %v160_v9 }
 0xac3   :  { %v723_v21 = vld [vmem:[#allocation3 + $0x10] sm:$0xff] }
 0xac4   :  { %v732_v29 = vld [vmem:[#allocation4 + $0x10] sm:$0xff] }
 0xb1b   :  { %v644_v13 = vpop.permute.xlu1 %643 }
 0xb1c   :  { %v646_v11 = vsel %vm46_vm0, %v2749_v44, %v644_v13 }
 0xb1d   :  { %v647_v14 = vsel %vm127_vm2, %v646_v11, 1.0 }
 0xb1e   :  { %2140 = vmatmul.mubr.msk.f32.vlgmr.msra.gmra.mrb[4].mxu0 %vm198_vm3, %v647_v14 }
 0xb1f   :  { %2293 = vmatpush3.bf16.msk.msra.mxu0 %vm2679_vm6, %v2677_v41  ;;  %2231 = vmatprep.mubr.msk.f32.mxu0 %vm2519_vm7, %v2513_v4 }
 0xb20   :  { %2295 = vmatprep.subr.bf16.mxu0 %v2608_v5 }
 0xbf1   :  { %v717_v15 = vpop.f32.mrb[4].mxu0 }
 0xbf2   :  { %734 = vrot.lane.b32.xlu1 %v717_v15, %s2516_s27  ;;  %v719_v16 = vpop.f32.mrb[5].mxu0  ;;  %v724_v22 = vadd.f32 %v723_v21, %v717_v15 }
 0xbf4   :  { %v2141_v23 = vmul.f32 -1.442695, %v724_v22 }
 0xbf6   :  { %2366 = vpow2.f32 %v2141_v23 }
 0xc00   :  { %v2367_v24 = vpop.eup %2366 }
 0xc01   :  { %v728_v25 = vadd.f32 1.0, %v2367_v24 }
 0xc03   :  { %2368 = vrcp.f32 %v728_v25 }
 0xc0d   :  { %v2369_v26 = vpop.eup %2368 }
 0xc64   :  { %v735_v27 = vpop.permute.xlu1 %734 }
 0xc65   :  { %v737_v28 = vmul.f32 %v2369_v26, %v735_v27 }
 0xc67   :  { %v738_v30 = vadd.f32 %v737_v28, %v732_v29 }
 0xc69   :  { %2370 = vtanh.f32 %v738_v30 }
 0xc73   :  { %v2371_v31 = vpop.eup %2370 }
 0xc74   :  { %v740_v32 = vsub.f32 %v2749_v44, %v2371_v31 }
 0xc76   :  { %742 = vrot.lane.b32.xlu0 %v740_v32, %s2515_s16 }
 0xc7a   :  { %833 = vrot.lane.b32.xlu0 %v719_v16, %s2516_s27 }
 0xce8   :  { %v743_v33 = vpop.permute.xlu0 %742 }
 0xce9   :  { %v745_v34 = vmul.f32 %v2369_v26, %v743_v33 }
 0xceb   :  { %747 = vrot.lane.b32.xlu1 %v745_v34, %s2520_s6 }
 0xcec   :  { %v834_v47 = vpop.permute.xlu0 %833 }
 0xd5d   :  { %v748_v35 = vpop.permute.xlu1 %747 }
 0xd5e   :  { %v2793_v36 = vadd.f32 %v2371_v31, %v748_v35 }
 0xd60   :  { %2225 = vmatmul.mubr.msk.f32.vlgmr.msra.gmra.mrb[4].mxu1 %vm46_vm0, %v2793_v36 }
 0xd61   :  { %2289 = vmatpush1.bf16.msra.mxu1 %v2614_v7  ;;  %932 = vmatprep.mubr.f32.mxu1 %v2513_v4 }
 0xd62   :  { %2145 = vmatprep.subr.msk.mxu1 %vm202_vm1, %v2619_v8 }
 0xd65   :  { %2146 = vmatpush1.msk.msra.mxu1 %vm202_vm1, %v2628_v10 }
 0xd66   :  { %2298 = vmatprep.subr.bf16.mxu1 %v2517_v40 }
 0xe33   :  { %v820_v37 = vpop.f32.mrb[4].mxu1 }
 0xe34   :  { %v824_v38 = vadd.f32 %v820_v37, %v719_v16  ;;  %v2226_v39 = vpop.f32.mrb[5].mxu1  ;;  %v831_v49 = vadd.f32 %v820_v37, %v2714_v59 }
 0xe36   :  { %v2144_v43 = vmul.f32 -1.442695, %v824_v38 }
 0xe38   :  { %2372 = vpow2.f32 %v2144_v43 }
 0xe42   :  { %v2373_v44 = vpop.eup %2372 }
 0xe43   :  { %v828_v45 = vadd.f32 1.0, %v2373_v44 }
 0xe45   :  { %2374 = vrcp.f32 %v828_v45 }
 0xe4f   :  { %v2375_v46 = vpop.eup %2374 }
 0xe50   :  { %v836_v48 = vmul.f32 %v2375_v46, %v834_v47 }
 0xe52   :  { %838 = vrot.lane.b32.xlu1 %v836_v48, %s2521_s15 }
 0xec4   :  { %v839_v50 = vpop.permute.xlu1 %838 }
 0xec5   :  { %v841_v51 = vadd.f32 %v839_v50, %v831_v49 }
 0xec7   :  { %2376 = vtanh.f32 %v841_v51 }
 0xed1   :  { %v2377_v52 = vpop.eup %2376 }
 0xed2   :  { %v843_v53 = vsub.f32 %v2768_v0, %v2377_v52 }
 0xed4   :  { %845 = vrot.lane.b32.xlu0 %v843_v53, %s2520_s6 }
 0xf46   :  { %v846_v54 = vpop.permute.xlu0 %845 }
 0xf47   :  { %v848_v55 = vmul.f32 %v2375_v46, %v846_v54 }
 0xf49   :  { %850 = vrot.lane.b32.xlu1 %v848_v55, %s2515_s16 }
 0xf4d   :  { %75 = vperm.xlu1 %2341, %v52_v56  }
 0xfbb   :  { %v851_v57 = vpop.permute.xlu1 %850 }
 0xfbc   :  { %v2812_v58 = vadd.f32 %v2377_v52, %v851_v57  ;;  %v53_v52 = vld [vmem:[%s3102_s0 + $0x20] sm:$0xff] }
 0xfbe   :  { %860 = vrot.lane.b32.xlu0 %v2812_v58, %s2520_s6 }
 0xfcc   :  { %v76_v60 = vpop.permute.xlu1 %75 }
 0xfcd   :  { %v107_v61 = vmul.f32 %v2645_v17, %v76_v60  ;;  %v146_v62 = vmul.f32 %v2650_v18, %v76_v60 }
 0xfcf   :  { %v122_v63 = vadd.f32 %v2655_v19, %v107_v61  ;;  %v161_v1 = vadd.f32 %v2660_v20, %v146_v62 }
 0xfd1   :  { %131 = vst.msk [vmem:[#allocation3 + $0x18] sm:$0xff] %vm127_vm2, %v122_v63 }
 0xfd2   :  { %170 = vst.msk [vmem:[#allocation4 + $0x18] sm:$0xff] %vm46_vm0, %v161_v1 }
 0xfd8   :  { %v940_v11 = vld [vmem:[#allocation3 + $0x18] sm:$0xff] }
 0xfd9   :  { %v949_v25 = vld [vmem:[#allocation4 + $0x18] sm:$0xff] }
0x1030   :  { %v861_v2 = vpop.permute.xlu0 %860 }
0x1031   :  { %v863_v3 = vsel %vm46_vm0, %v2793_v36, %v861_v2 }
0x1032   :  { %v864_v6 = vsel %vm127_vm2, %v863_v3, 1.0 }
0x1033   :  { %2147 = vmatmul.mubr.msk.f32.vlgmr.msra.gmra.mrb[6].mxu1 %vm198_vm3, %v864_v6 }
0x1034   :  { %2301 = vmatpush3.bf16.msk.msra.mxu1 %vm2679_vm6, %v2677_v41  ;;  %2238 = vmatprep.mubr.msk.f32.mxu1 %vm2519_vm7, %v2513_v4 }
0x1035   :  { %2303 = vmatprep.subr.bf16.mxu1 %v2608_v5 }
0x1106   :  { %v934_v9 = vpop.f32.mrb[6].mxu1 }
0x1107   :  { %951 = vrot.lane.b32.xlu0 %v934_v9, %s2516_s27  ;;  %v936_v13 = vpop.f32.mrb[7].mxu1  ;;  %v941_v14 = vadd.f32 %v940_v11, %v934_v9 }
0x1109   :  { %v2148_v15 = vmul.f32 -1.442695, %v941_v14 }
0x110b   :  { %2378 = vpow2.f32 %v2148_v15 }
0x1115   :  { %v2379_v16 = vpop.eup %2378 }
0x1116   :  { %v945_v21 = vadd.f32 1.0, %v2379_v16 }
0x1118   :  { %2380 = vrcp.f32 %v945_v21 }
0x1122   :  { %v2381_v22 = vpop.eup %2380 }
0x1179   :  { %v952_v23 = vpop.permute.xlu0 %951 }
0x117a   :  { %v954_v24 = vmul.f32 %v2381_v22, %v952_v23 }
0x117c   :  { %v955_v26 = vadd.f32 %v954_v24, %v949_v25 }
0x117e   :  { %2382 = vtanh.f32 %v955_v26 }
0x1188   :  { %v2383_v27 = vpop.eup %2382 }
0x1189   :  { %v957_v28 = vsub.f32 %v2793_v36, %v2383_v27 }
0x118b   :  { %959 = vrot.lane.b32.xlu1 %v957_v28, %s2515_s16 }
0x118f   :  { %1050 = vrot.lane.b32.xlu1 %v936_v13, %s2516_s27 }
0x11fd   :  { %v960_v29 = vpop.permute.xlu1 %959 }
0x11fe   :  { %v962_v30 = vmul.f32 %v2381_v22, %v960_v29 }
0x1200   :  { %964 = vrot.lane.b32.xlu0 %v962_v30, %s2520_s6 }
0x1201   :  { %v1051_v43 = vpop.permute.xlu1 %1050 }
0x1272   :  { %v965_v31 = vpop.permute.xlu0 %964 }
0x1273   :  { %v2837_v32 = vadd.f32 %v2383_v27, %v965_v31 }
0x1275   :  { %2232 = vmatmul.mubr.msk.f32.vlgmr.msra.gmra.mrb[6].mxu0 %vm46_vm0, %v2837_v32 }
0x1276   :  { %2297 = vmatpush1.bf16.msra.mxu0 %v2614_v7  ;;  %1149 = vmatprep.mubr.f32.mxu0 %v2513_v4 }
0x1277   :  { %2152 = vmatprep.subr.msk.mxu0 %vm202_vm1, %v2619_v8 }
0x127a   :  { %2153 = vmatpush1.msk.msra.mxu0 %vm202_vm1, %v2628_v10 }
0x127b   :  { %2306 = vmatprep.subr.bf16.mxu0 %v2517_v40 }
0x1348   :  { %v1037_v33 = vpop.f32.mrb[6].mxu0 }
0x1349   :  { %v1041_v34 = vadd.f32 %v1037_v33, %v936_v13  ;;  %v2233_v35 = vpop.f32.mrb[7].mxu0  ;;  %v1048_v45 = vadd.f32 %v1037_v33, %v2714_v59 }
0x134b   :  { %v2151_v36 = vmul.f32 -1.442695, %v1041_v34 }
0x134d   :  { %2384 = vpow2.f32 %v2151_v36 }
0x1357   :  { %v2385_v37 = vpop.eup %2384 }
0x1358   :  { %v1045_v38 = vadd.f32 1.0, %v2385_v37 }
0x135a   :  { %2386 = vrcp.f32 %v1045_v38 }
0x1364   :  { %v2387_v39 = vpop.eup %2386 }
0x1365   :  { %v1053_v44 = vmul.f32 %v2387_v39, %v1051_v43 }
0x1367   :  { %1055 = vrot.lane.b32.xlu0 %v1053_v44, %s2521_s15 }
0x13d9   :  { %v1056_v46 = vpop.permute.xlu0 %1055 }
0x13da   :  { %v1058_v47 = vadd.f32 %v1056_v46, %v1048_v45 }
0x13dc   :  { %2388 = vtanh.f32 %v1058_v47 }
0x13e6   :  { %v2389_v48 = vpop.eup %2388 }
0x13e7   :  { %v1060_v49 = vsub.f32 %v2812_v58, %v2389_v48 }
0x13e9   :  { %1062 = vrot.lane.b32.xlu1 %v1060_v49, %s2520_s6  ;;  %v54_v49 = vld [vmem:[%s3102_s0 + $0x28] sm:$0xff] }
0x145b   :  { %v1063_v50 = vpop.permute.xlu1 %1062 }
0x145c   :  { %v1065_v51 = vmul.f32 %v2387_v39, %v1063_v50 }
0x145e   :  { %1067 = vrot.lane.b32.xlu0 %v1065_v51, %s2515_s16 }
0x1462   :  { %80 = vperm.xlu0 %2340, %v53_v52  }
0x14d0   :  { %v1068_v53 = vpop.permute.xlu0 %1067 }
0x14d1   :  { %v2856_v54 = vadd.f32 %v2389_v48, %v1068_v53 }
0x14d3   :  { %1077 = vrot.lane.b32.xlu1 %v2856_v54, %s2520_s6 }
0x14e1   :  { %v81_v55 = vpop.permute.xlu0 %80 }
0x14e2   :  { %v108_v56 = vmul.f32 %v2645_v17, %v81_v55  ;;  %v147_v57 = vmul.f32 %v2650_v18, %v81_v55 }
0x14e4   :  { %v123_v60 = vadd.f32 %v2655_v19, %v108_v56  ;;  %v162_v61 = vadd.f32 %v2660_v20, %v147_v57 }
0x14e6   :  { %132 = vst.msk [vmem:[#allocation3 + $0x20] sm:$0xff] %vm127_vm2, %v123_v60 }
0x14e7   :  { %171 = vst.msk [vmem:[#allocation4 + $0x20] sm:$0xff] %vm46_vm0, %v162_v61 }
0x14ed   :  { %v1157_v6 = vld [vmem:[#allocation3 + $0x20] sm:$0xff] }
0x14ee   :  { %v1166_v22 = vld [vmem:[#allocation4 + $0x20] sm:$0xff] }
0x1545   :  { %v1078_v62 = vpop.permute.xlu1 %1077 }
0x1546   :  { %v1080_v63 = vsel %vm46_vm0, %v2837_v32, %v1078_v62 }
0x1547   :  { %v1081_v1 = vsel %vm127_vm2, %v1080_v63, 1.0 }
0x1548   :  { %2154 = vmatmul.mubr.msk.f32.vlgmr.msra.gmra.mrb[8].mxu0 %vm198_vm3, %v1081_v1 }
0x1549   :  { %2309 = vmatpush3.bf16.msk.msra.mxu0 %vm2679_vm6, %v2677_v41  ;;  %2245 = vmatprep.mubr.msk.f32.mxu0 %vm2519_vm7, %v2513_v4 }
0x154a   :  { %2311 = vmatprep.subr.bf16.mxu0 %v2608_v5 }
0x161b   :  { %v1151_v2 = vpop.f32.mrb[8].mxu0 }
0x161c   :  { %1168 = vrot.lane.b32.xlu1 %v1151_v2, %s2516_s27  ;;  %v1153_v3 = vpop.f32.mrb[9].mxu0  ;;  %v1158_v9 = vadd.f32 %v1157_v6, %v1151_v2 }
0x161e   :  { %v2155_v13 = vmul.f32 -1.442695, %v1158_v9 }
0x1620   :  { %2390 = vpow2.f32 %v2155_v13 }
0x162a   :  { %v2391_v11 = vpop.eup %2390 }
0x162b   :  { %v1162_v14 = vadd.f32 1.0, %v2391_v11 }
0x162d   :  { %2392 = vrcp.f32 %v1162_v14 }
0x1637   :  { %v2393_v15 = vpop.eup %2392 }
0x168e   :  { %v1169_v16 = vpop.permute.xlu1 %1168 }
0x168f   :  { %v1171_v21 = vmul.f32 %v2393_v15, %v1169_v16 }
0x1691   :  { %v1172_v23 = vadd.f32 %v1171_v21, %v1166_v22 }
0x1693   :  { %2394 = vtanh.f32 %v1172_v23 }
0x169d   :  { %v2395_v24 = vpop.eup %2394 }
0x169e   :  { %v1174_v25 = vsub.f32 %v2837_v32, %v2395_v24 }
0x16a0   :  { %1176 = vrot.lane.b32.xlu0 %v1174_v25, %s2515_s16 }
0x16a4   :  { %1267 = vrot.lane.b32.xlu0 %v1153_v3, %s2516_s27 }
0x1712   :  { %v1177_v26 = vpop.permute.xlu0 %1176 }
0x1713   :  { %v1179_v27 = vmul.f32 %v2393_v15, %v1177_v26 }
0x1715   :  { %1181 = vrot.lane.b32.xlu1 %v1179_v27, %s2520_s6 }
0x1716   :  { %v1268_v37 = vpop.permute.xlu0 %1267 }
0x1787   :  { %v1182_v28 = vpop.permute.xlu1 %1181 }
0x1788   :  { %v2881_v29 = vadd.f32 %v2395_v24, %v1182_v28 }
0x178a   :  { %2239 = vmatmul.mubr.msk.f32.vlgmr.msra.gmra.mrb[8].mxu1 %vm46_vm0, %v2881_v29 }
0x178b   :  { %2305 = vmatpush1.bf16.msra.mxu1 %v2614_v7  ;;  %1366 = vmatprep.mubr.f32.mxu1 %v2513_v4 }
0x178c   :  { %2159 = vmatprep.subr.msk.mxu1 %vm202_vm1, %v2619_v8 }
0x178f   :  { %2160 = vmatpush1.msk.msra.mxu1 %vm202_vm1, %v2628_v10 }
0x1790   :  { %2314 = vmatprep.subr.bf16.mxu1 %v2517_v40 }
0x185d   :  { %v1254_v30 = vpop.f32.mrb[8].mxu1 }
0x185e   :  { %v1258_v31 = vadd.f32 %v1254_v30, %v1153_v3  ;;  %v2240_v32 = vpop.f32.mrb[9].mxu1  ;;  %v1265_v39 = vadd.f32 %v1254_v30, %v2714_v59 }
0x1860   :  { %v2158_v33 = vmul.f32 -1.442695, %v1258_v31 }
0x1862   :  { %2396 = vpow2.f32 %v2158_v33 }
0x186c   :  { %v2397_v34 = vpop.eup %2396 }
0x186d   :  { %v1262_v35 = vadd.f32 1.0, %v2397_v34 }
0x186f   :  { %2398 = vrcp.f32 %v1262_v35 }
0x1879   :  { %v2399_v36 = vpop.eup %2398 }
0x187a   :  { %v1270_v38 = vmul.f32 %v2399_v36, %v1268_v37 }
0x187c   :  { %1272 = vrot.lane.b32.xlu1 %v1270_v38, %s2521_s15 }
0x18ee   :  { %v1273_v43 = vpop.permute.xlu1 %1272 }
0x18ef   :  { %v1275_v44 = vadd.f32 %v1273_v43, %v1265_v39 }
0x18f1   :  { %2400 = vtanh.f32 %v1275_v44  ;;  %v55_v44 = vld [vmem:[%s3102_s0 + $0x30] sm:$0xff] }
0x18fb   :  { %v2401_v45 = vpop.eup %2400 }
0x18fc   :  { %v1277_v46 = vsub.f32 %v2856_v54, %v2401_v45 }
0x18fe   :  { %1279 = vrot.lane.b32.xlu0 %v1277_v46, %s2520_s6 }
0x1970   :  { %v1280_v47 = vpop.permute.xlu0 %1279 }
0x1971   :  { %v1282_v48 = vmul.f32 %v2399_v36, %v1280_v47 }
0x1973   :  { %1284 = vrot.lane.b32.xlu1 %v1282_v48, %s2515_s16 }
0x1977   :  { %85 = vperm.xlu1 %2341, %v54_v49  }
0x19e5   :  { %v1285_v50 = vpop.permute.xlu1 %1284 }
0x19e6   :  { %v2900_v51 = vadd.f32 %v2401_v45, %v1285_v50 }
0x19e8   :  { %1294 = vrot.lane.b32.xlu0 %v2900_v51, %s2520_s6 }
0x19f6   :  { %v86_v52 = vpop.permute.xlu1 %85 }
0x19f7   :  { %v109_v53 = vmul.f32 %v2645_v17, %v86_v52  ;;  %v148_v55 = vmul.f32 %v2650_v18, %v86_v52 }
0x19f9   :  { %v124_v56 = vadd.f32 %v2655_v19, %v109_v53  ;;  %v163_v57 = vadd.f32 %v2660_v20, %v148_v55 }
0x19fb   :  { %133 = vst.msk [vmem:[#allocation3 + $0x28] sm:$0xff] %vm127_vm2, %v124_v56 }
0x19fc   :  { %172 = vst.msk [vmem:[#allocation4 + $0x28] sm:$0xff] %vm46_vm0, %v163_v57 }
0x1a02   :  { %v1374_v2 = vld [vmem:[#allocation3 + $0x28] sm:$0xff] }
0x1a03   :  { %v1383_v16 = vld [vmem:[#allocation4 + $0x28] sm:$0xff] }
0x1a5a   :  { %v1295_v60 = vpop.permute.xlu0 %1294 }
0x1a5b   :  { %v1297_v61 = vsel %vm46_vm0, %v2881_v29, %v1295_v60 }
0x1a5c   :  { %v1298_v62 = vsel %vm127_vm2, %v1297_v61, 1.0 }
0x1a5d   :  { %2161 = vmatmul.mubr.msk.f32.vlgmr.msra.gmra.mrb[10].mxu1 %vm198_vm3, %v1298_v62 }
0x1a5e   :  { %2317 = vmatpush3.bf16.msk.msra.mxu1 %vm2679_vm6, %v2677_v41  ;;  %2252 = vmatprep.mubr.msk.f32.mxu1 %vm2519_vm7, %v2513_v4 }
0x1a5f   :  { %2319 = vmatprep.subr.bf16.mxu1 %v2608_v5 }
0x1b30   :  { %v1368_v63 = vpop.f32.mrb[10].mxu1 }
0x1b31   :  { %1385 = vrot.lane.b32.xlu0 %v1368_v63, %s2516_s27  ;;  %v1370_v1 = vpop.f32.mrb[11].mxu1  ;;  %v1375_v3 = vadd.f32 %v1374_v2, %v1368_v63 }
0x1b33   :  { %v2162_v6 = vmul.f32 -1.442695, %v1375_v3 }
0x1b35   :  { %2402 = vpow2.f32 %v2162_v6 }
0x1b3f   :  { %v2403_v9 = vpop.eup %2402 }
0x1b40   :  { %v1379_v13 = vadd.f32 1.0, %v2403_v9 }
0x1b42   :  { %2404 = vrcp.f32 %v1379_v13 }
0x1b4c   :  { %v2405_v11 = vpop.eup %2404 }
0x1ba3   :  { %v1386_v14 = vpop.permute.xlu0 %1385 }
0x1ba4   :  { %v1388_v15 = vmul.f32 %v2405_v11, %v1386_v14  ;;  %v2438_v14 = vld [vmem:[%s3107_s5 + $0x28] sm:$0x1f] }
0x1ba6   :  { %v1389_v21 = vadd.f32 %v1388_v15, %v1383_v16 }
0x1ba8   :  { %2406 = vtanh.f32 %v1389_v21 }
0x1bb2   :  { %v2407_v22 = vpop.eup %2406 }
0x1bb3   :  { %v1391_v5 = vsub.f32 %v2881_v29, %v2407_v22 }
0x1bb5   :  { %1393 = vrot.lane.b32.xlu1 %v1391_v5, %s2515_s16 }
0x1bb9   :  { %1484 = vrot.lane.b32.xlu1 %v1370_v1, %s2516_s27 }
0x1c27   :  { %v1394_v23 = vpop.permute.xlu1 %1393 }
0x1c28   :  { %v1396_v24 = vmul.f32 %v2405_v11, %v1394_v23 }
0x1c2a   :  { %1398 = vrot.lane.b32.xlu0 %v1396_v24, %s2520_s6 }
0x1c2b   :  { %v1485_v34 = vpop.permute.xlu1 %1484 }
0x1c9c   :  { %v1399_v25 = vpop.permute.xlu0 %1398 }
0x1c9d   :  { %v2925_v26 = vadd.f32 %v2407_v22, %v1399_v25 }
0x1c9f   :  { %2246 = vmatmul.mubr.msk.f32.vlgmr.msra.gmra.mrb[10].mxu0 %vm46_vm0, %v2925_v26 }
0x1ca0   :  { %2313 = vmatpush1.bf16.msra.mxu0 %v2614_v7  ;;  %1583 = vmatprep.mubr.f32.mxu0 %v2513_v4 }
0x1ca1   :  { %2166 = vmatprep.subr.msk.mxu0 %vm202_vm1, %v2619_v8 }
0x1ca4   :  { %2167 = vmatpush1.msk.msra.mxu0 %vm202_vm1, %v2628_v10 }
0x1ca5   :  { %2322 = vmatprep.subr.bf16.mxu0 %v2517_v40 }
0x1d72   :  { %v1471_v27 = vpop.f32.mrb[10].mxu0 }
0x1d73   :  { %v1475_v28 = vadd.f32 %v1471_v27, %v1370_v1  ;;  %v2247_v29 = vpop.f32.mrb[11].mxu0  ;;  %v1482_v8 = vadd.f32 %v1471_v27, %v2714_v59 }
0x1d75   :  { %v2165_v30 = vmul.f32 -1.442695, %v1475_v28 }
0x1d77   :  { %2408 = vpow2.f32 %v2165_v30 }
0x1d81   :  { %v2409_v31 = vpop.eup %2408 }
0x1d82   :  { %v1479_v32 = vadd.f32 1.0, %v2409_v31  ;;  %v56_v31 = vld [vmem:[%s3102_s0 + $0x38] sm:$0xff] }
0x1d84   :  { %2410 = vrcp.f32 %v1479_v32 }
0x1d8e   :  { %v2411_v33 = vpop.eup %2410 }
0x1d8f   :  { %v1487_v35 = vmul.f32 %v2411_v33, %v1485_v34 }
0x1d91   :  { %1489 = vrot.lane.b32.xlu0 %v1487_v35, %s2521_s15  ;;  %v2439_v35 = vld [vmem:[%s3103_s1] ss:$0 sm:$0xff] }
0x1e03   :  { %v1490_v36 = vpop.permute.xlu0 %1489 }
0x1e04   :  { %v1492_v37 = vadd.f32 %v1490_v36, %v1482_v8  ;;  %v2440_v36 = vld [vmem:[%s3104_s2] ss:$0 sm:$0xff] }
0x1e06   :  { %2412 = vtanh.f32 %v1492_v37 }
0x1e10   :  { %v2413_v38 = vpop.eup %2412 }
0x1e11   :  { %v1494_v40 = vsub.f32 %v2900_v51, %v2413_v38 }
0x1e13   :  { %1496 = vrot.lane.b32.xlu1 %v1494_v40, %s2520_s6 }
0x1e85   :  { %v1497_v39 = vpop.permute.xlu1 %1496 }
0x1e86   :  { %v1499_v43 = vmul.f32 %v2411_v33, %v1497_v39  ;;  %v2442_v39 = vld [vmem:[%s3106_s4] ss:$0 sm:$0xff] }
0x1e88   :  { %1501 = vrot.lane.b32.xlu0 %v1499_v43, %s2515_s16 }
0x1e8c   :  { %90 = vperm.xlu0 %2340, %v55_v44  }
0x1efa   :  { %v1502_v45 = vpop.permute.xlu0 %1501 }
0x1efb   :  { %v2944_v46 = vadd.f32 %v2413_v38, %v1502_v45  ;;  %v2441_v38 = vld [vmem:[%s3105_s3] ss:$0 sm:$0xff]  ;;  %s2522_s3 = smov [#allocation8]  }
0x1efc   :  { %s2091_s4 = sshll.u32 %s2522_s3, 4  ;;  %s2092_s4 = int_to_ptr.vmem [resolvable:$true] %s2091_s4 }
0x1efd   :  { %1511 = vrot.lane.b32.xlu1 %v2944_v46, %s2520_s6  ;;  %p2448_p1 = scmp.lt.s32.totalorder %s2092_s4, %s2092_s4 }
0x1f0b   :  { %v91_v47 = vpop.permute.xlu0 %90 }
0x1f0c   :  { %v110_v48 = vmul.f32 %v2645_v17, %v91_v47  ;;  %v149_v49 = vmul.f32 %v2650_v18, %v91_v47 }
0x1f0e   :  { %v125_v50 = vadd.f32 %v2655_v19, %v110_v48  ;;  %v164_v52 = vadd.f32 %v2660_v20, %v149_v49 }
0x1f10   :  { %134 = vst.msk [vmem:[#allocation3 + $0x30] sm:$0xff] %vm127_vm2, %v125_v50 }
0x1f11   :  { %173 = vst.msk [vmem:[#allocation4 + $0x30] sm:$0xff] %vm46_vm0, %v164_v52 }
0x1f17   :  { %v1591_v19 = vld [vmem:[#allocation3 + $0x30] sm:$0xff] }
0x1f18   :  { %v1600_v2 = vld [vmem:[#allocation4 + $0x30] sm:$0xff] }
0x1f6f   :  { %v1512_v53 = vpop.permute.xlu1 %1511 }
0x1f70   :  { %v1514_v55 = vsel %vm46_vm0, %v2925_v26, %v1512_v53 }
0x1f71   :  { %v1515_v56 = vsel %vm127_vm2, %v1514_v55, 1.0 }
0x1f72   :  { %2168 = vmatmul.mubr.msk.f32.vlgmr.msra.gmra.mrb[12].mxu0 %vm198_vm3, %v1515_v56 }
0x1f73   :  { %2325 = vmatpush3.bf16.msk.msra.mxu0 %vm2679_vm6, %v2677_v41  ;;  %2259 = vmatprep.mubr.msk.f32.mxu0 %vm2519_vm7, %v2513_v4 }
0x2045   :  { %v1585_v17 = vpop.f32.mrb[12].mxu0 }
0x2046   :  { %1602 = vrot.lane.b32.xlu1 %v1585_v17, %s2516_s27  ;;  %v1587_v18 = vpop.f32.mrb[13].mxu0  ;;  %v1592_v20 = vadd.f32 %v1591_v19, %v1585_v17 }
0x2048   :  { %v2169_v57 = vmul.f32 -1.442695, %v1592_v20 }
0x204a   :  { %2414 = vpow2.f32 %v2169_v57 }
0x2054   :  { %v2415_v60 = vpop.eup %2414 }
0x2055   :  { %v1596_v61 = vadd.f32 1.0, %v2415_v60 }
0x2057   :  { %2416 = vrcp.f32 %v1596_v61 }
0x2061   :  { %v2417_v62 = vpop.eup %2416 }
0x20b8   :  { %v1603_v63 = vpop.permute.xlu1 %1602 }
0x20b9   :  { %v1605_v1 = vmul.f32 %v2417_v62, %v1603_v63 }
0x20bb   :  { %v1606_v42 = vadd.f32 %v1605_v1, %v1600_v2 }
0x20bd   :  { %2418 = vtanh.f32 %v1606_v42 }
0x20c7   :  { %v2419_v41 = vpop.eup %2418 }
0x20c8   :  { %v1608_v3 = vsub.f32 %v2925_v26, %v2419_v41 }
0x20ca   :  { %1610 = vrot.lane.b32.xlu0 %v1608_v3, %s2515_s16 }
0x20ce   :  { %1701 = vrot.lane.b32.xlu0 %v1587_v18, %s2516_s27 }
0x213c   :  { %v1611_v6 = vpop.permute.xlu0 %1610 }
0x213d   :  { %v1613_v9 = vmul.f32 %v2417_v62, %v1611_v6 }
0x213f   :  { %1615 = vrot.lane.b32.xlu1 %v1613_v9, %s2520_s6 }
0x2140   :  { %v1702_v24 = vpop.permute.xlu0 %1701 }
0x21b1   :  { %v1616_v13 = vpop.permute.xlu1 %1615 }
0x21b2   :  { %v2968_v11 = vadd.f32 %v2419_v41, %v1616_v13 }
0x21b4   :  { %2253 = vmatmul.mubr.msk.f32.vlgmr.msra.gmra.mrb[12].mxu1 %vm46_vm0, %v2968_v11 }
0x21b5   :  { %2321 = vmatpush1.bf16.msra.mxu1 %v2614_v7  ;;  %1800 = vmatprep.mubr.f32.mxu1 %v2513_v4 }
0x21b6   :  { %2173 = vmatprep.subr.msk.mxu1 %vm202_vm1, %v2438_v14 }
0x21b9   :  { %2174 = vmatpush1.msk.msra.mxu1 %vm202_vm1, %v2628_v10 }
0x2287   :  { %v1688_v15 = vpop.f32.mrb[12].mxu1 }
0x2288   :  { %v1692_v16 = vadd.f32 %v1688_v15, %v1587_v18  ;;  %v2254_v21 = vpop.f32.mrb[13].mxu1  ;;  %v1699_v25 = vadd.f32 %v1688_v15, %v2714_v59 }
0x228a   :  { %v2172_v22 = vmul.f32 -1.442695, %v1692_v16 }
0x228c   :  { %2420 = vpow2.f32 %v2172_v22 }
0x2296   :  { %v2421_v5 = vpop.eup %2420 }
0x2297   :  { %v1696_v23 = vadd.f32 1.0, %v2421_v5 }
0x2299   :  { %2422 = vrcp.f32 %v1696_v23 }
0x22a3   :  { %v2423_v7 = vpop.eup %2422 }
0x22a4   :  { %v1704_v4 = vmul.f32 %v2423_v7, %v1702_v24 }
0x22a6   :  { %1706 = vrot.lane.b32.xlu1 %v1704_v4, %s2521_s15 }
0x2318   :  { %v1707_v26 = vpop.permute.xlu1 %1706 }
0x2319   :  { %v1709_v27 = vadd.f32 %v1707_v26, %v1699_v25 }
0x231b   :  { %2424 = vtanh.f32 %v1709_v27 }
0x2325   :  { %v2425_v28 = vpop.eup %2424 }
0x2326   :  { %v1711_v10 = vsub.f32 %v2944_v46, %v2425_v28 }
0x2328   :  { %1713 = vrot.lane.b32.xlu0 %v1711_v10, %s2520_s6 }
0x239a   :  { %v1714_v29 = vpop.permute.xlu0 %1713 }
0x239b   :  { %v1716_v30 = vmul.f32 %v2423_v7, %v1714_v29 }
0x239d   :  { %1718 = vrot.lane.b32.xlu1 %v1716_v30, %s2515_s16 }
0x23a1   :  { %95 = vperm.xlu1 %2341, %v56_v31  }
0x240f   :  { %v1719_v32 = vpop.permute.xlu1 %1718 }
0x2410   :  { %v2988_v33 = vadd.f32 %v2425_v28, %v1719_v32 }
0x2412   :  { %1728 = vrot.lane.b32.xlu0 %v2988_v33, %s2520_s6 }
0x2420   :  { %v96_v34 = vpop.permute.xlu1 %95 }
0x2421   :  { %v111_v8 = vmul.f32 %v2439_v35, %v96_v34  ;;  %v150_v37 = vmul.f32 %v2440_v36, %v96_v34 }
0x2423   :  { %v126_v40 = vadd.f32 %v2441_v38, %v111_v8  ;;  %v165_v43 = vadd.f32 %v2442_v39, %v150_v37 }
0x2425   :  { %135 = vst.msk [vmem:[#allocation3 + $0x38] sm:$0xff] %vm127_vm2, %v126_v40 }
0x2426   :  { %174 = vst.msk [vmem:[#allocation4 + $0x38] sm:$0xff] %vm46_vm0, %v165_v43 }
0x242c   :  { %v1808_v50 = vld [vmem:[#allocation3 + $0x38] sm:$0xff] }
0x242d   :  { %v1817_v20 = vld [vmem:[#allocation4 + $0x38] sm:$0xff] }
0x2484   :  { %v1729_v44 = vpop.permute.xlu0 %1728 }
0x2485   :  { %v1731_v45 = vsel %vm46_vm0, %v2968_v11, %v1729_v44 }
0x2486   :  { %v1732_v47 = vsel %vm127_vm2, %v1731_v45, 1.0 }
0x2487   :  { %2175 = vmatmul.mubr.msk.f32.vlgmr.msra.gmra.mrb[14].mxu1 %vm198_vm3, %v1732_v47 }
0x255a   :  { %v1802_v48 = vpop.f32.mrb[14].mxu1 }
0x255b   :  { %1819 = vrot.lane.b32.xlu0 %v1802_v48, %s2516_s27  ;;  %v1804_v49 = vpop.f32.mrb[15].mxu1  ;;  %v1809_v52 = vadd.f32 %v1808_v50, %v1802_v48 }
0x255d   :  { %v2176_v53 = vmul.f32 -1.442695, %v1809_v52 }
0x255f   :  { %2426 = vpow2.f32 %v2176_v53 }
0x2569   :  { %v2427_v55 = vpop.eup %2426 }
0x256a   :  { %v1813_v56 = vadd.f32 1.0, %v2427_v55 }
0x256c   :  { %2428 = vrcp.f32 %v1813_v56 }
0x2576   :  { %v2429_v17 = vpop.eup %2428 }
0x25cd   :  { %v1820_v18 = vpop.permute.xlu0 %1819 }
0x25ce   :  { %v1822_v19 = vmul.f32 %v2429_v17, %v1820_v18 }
0x25d0   :  { %v1823_v57 = vadd.f32 %v1822_v19, %v1817_v20 }
0x25d2   :  { %2430 = vtanh.f32 %v1823_v57 }
0x25dc   :  { %v2431_v60 = vpop.eup %2430 }
0x25dd   :  { %v1825_v61 = vsub.f32 %v2968_v11, %v2431_v60 }
0x25df   :  { %1827 = vrot.lane.b32.xlu1 %v1825_v61, %s2515_s16 }
0x25e3   :  { %1918 = vrot.lane.b32.xlu1 %v1804_v49, %s2516_s27 }
0x2651   :  { %v1828_v62 = vpop.permute.xlu1 %1827 }
0x2652   :  { %v1830_v63 = vmul.f32 %v2429_v17, %v1828_v62 }
0x2654   :  { %1832 = vrot.lane.b32.xlu0 %v1830_v63, %s2520_s6 }
0x2655   :  { %v1919_v14 = vpop.permute.xlu1 %1918 }
0x26c6   :  { %v1833_v1 = vpop.permute.xlu0 %1832 }
0x26c7   :  { %v1835_v2 = vadd.f32 %v2431_v60, %v1833_v1 }
0x26c9   :  { %1945 = vst.msk [vmem:[#allocation2] sm:$0xff] %vm46_vm0, %v1835_v2  ;;  %1947 = vst.msk [vmem:[#allocation8] sm:$0xff] %vm46_vm0, %v1835_v2  ;;  %2260 = vmatmul.mubr.msk.f32.vlgmr.msra.gmra.mrb[14].mxu0 %vm46_vm0, %v1835_v2 }
0x279c   :  { %v1905_v42 = vpop.f32.mrb[14].mxu0 }
0x279d   :  { %v1909_v41 = vadd.f32 %v1905_v42, %v1804_v49  ;;  %v2261_v3 = vpop.f32.mrb[15].mxu0  ;;  %v1916_v16 = vadd.f32 %v1905_v42, %v2714_v59  ;;  %v2181_v49 = vld [vmem:[#allocation5] ss:$0 sm:$0xff] }
0x279f   :  { %v2179_v6 = vmul.f32 -1.442695, %v1909_v41 }
0x27a1   :  { %2432 = vpow2.f32 %v2179_v6 }
0x27ab   :  { %v2433_v9 = vpop.eup %2432 }
0x27ac   :  { %v1913_v13 = vadd.f32 1.0, %v2433_v9 }
0x27ae   :  { %2434 = vrcp.f32 %v1913_v13 }
0x27b8   :  { %v2435_v11 = vpop.eup %2434 }
0x27b9   :  { %v1921_v15 = vmul.f32 %v2435_v11, %v1919_v14 }
0x27bb   :  { %1923 = vrot.lane.b32.xlu0 %v1921_v15, %s2521_s15 }
0x282d   :  { %v1924_v21 = vpop.permute.xlu0 %1923 }
0x282e   :  { %v1926_v22 = vadd.f32 %v1924_v21, %v1916_v16 }
0x2830   :  { %2436 = vtanh.f32 %v1926_v22 }
0x283a   :  { %v2437_v5 = vpop.eup %2436 }
0x283b   :  { %v1928_v23 = vsub.f32 %v2988_v33, %v2437_v5 }
0x283d   :  { %1930 = vrot.lane.b32.xlu1 %v1928_v23, %s2520_s6 }
0x2841   :  { %422 = vrot.lane.b32.xlu1 %v2724_v12, %s2516_s27 }
0x2845   :  { %855 = vrot.lane.b32.xlu1 %v2812_v58, %s2516_s27  ;;  %v2180_v58 = vld [vmem:[%s3110_s8] ss:$0 sm:$0xff]  ;;  %s2523_s8 = smov [#allocation6]  }
0x2849   :  { %1289 = vrot.lane.b32.xlu1 %v2900_v51, %s2516_s27 }
0x284d   :  { %1723 = vrot.lane.b32.xlu1 %v2988_v33, %s2516_s27 }
0x28af   :  { %v1931_v59 = vpop.permute.xlu1 %1930 }
0x28b0   :  { %v1933_v7 = vmul.f32 %v2435_v11, %v1931_v59 }
0x28b2   :  { %1935 = vrot.lane.b32.xlu0 %v1933_v7, %s2515_s16  ;;  %s2079_s16 = sshll.u32 %s2523_s8, 4  ;;  %s3059_s16 = int_to_ptr.vmem [resolvable:$true] %s2079_s16 }
0x28b3   :  { %v423_v24 = vpop.permute.xlu1 %422 }
0x28b4   :  { %425 = vst.msk [vmem:[#allocation6] sm:$0xff] %vm46_vm0, %v423_v24 }
0x28b6   :  { %638 = vrot.lane.b32.xlu0 %v2768_v0, %s2516_s27 }
0x28b7   :  { %v856_v12 = vpop.permute.xlu1 %855 }
0x28b8   :  { %859 = vst.msk [vmem:[#allocation6 + $0x10] sm:$0xff] %vm46_vm0, %v856_v12 }
0x28ba   :  { %1072 = vrot.lane.b32.xlu0 %v2856_v54, %s2516_s27 }
0x28bb   :  { %v1290_v51 = vpop.permute.xlu1 %1289  ;;  %v1950_v4 = vld [vmem:[#allocation6] sm:$0xff] }
0x28bc   :  { %1293 = vst.msk [vmem:[#allocation6 + $0x20] sm:$0xff] %vm46_vm0, %v1290_v51  ;;  %v1965_v25 = vmul.f32 %v2180_v58, %v1950_v4 }
0x28be   :  { %1506 = vrot.lane.b32.xlu0 %v2944_v46, %s2516_s27  ;;  %v1973_v0 = vsel %vm46_vm0, %v1965_v25, 0.0 }
0x28bf   :  { %1974 = vadd.xlane.f32.xlu1 %v1973_v0  ;;  %v1724_v26 = vpop.permute.xlu1 %1723  ;;  %v1952_v36 = vld [vmem:[#allocation6 + $0x10] sm:$0xff] }
0x28c0   :  { %1727 = vst.msk [vmem:[#allocation6 + $0x30] sm:$0xff] %vm46_vm0, %v1724_v26  ;;  %v1967_v38 = vmul.f32 %v2180_v58, %v1952_v36 }
0x28c2   :  { %v1979_v39 = vsel %vm46_vm0, %v1967_v38, 0.0 }
0x28c3   :  { %v1954_v40 = vld [vmem:[#allocation6 + $0x20] sm:$0xff] }
0x28c4   :  { %v1969_v43 = vmul.f32 %v2180_v58, %v1954_v40 }
0x28c6   :  { %v1985_v45 = vsel %vm46_vm0, %v1969_v43, 0.0 }
0x28c7   :  { %v1956_v44 = vld [vmem:[#allocation6 + $0x30] sm:$0xff] }
0x28c8   :  { %v1971_v47 = vmul.f32 %v2180_v58, %v1956_v44 }
0x28ca   :  { %v1991_v48 = vsel %vm46_vm0, %v1971_v47, 0.0 }
0x2924   :  { %v1936_v27 = vpop.permute.xlu0 %1935 }
0x2925   :  { %v1938_v28 = vadd.f32 %v2437_v5, %v1936_v27 }
0x2927   :  { %1940 = vrot.lane.b32.xlu0 %v1938_v28, %s2516_s27  ;;  %s2443_s27 = scalar_lea.vmem %s2092_s4, 256 }
0x2928   :  { %v639_v10 = vpop.permute.xlu0 %638  ;;  %p2444_p0 = scmp.ne.s32.totalorder %s2092_s4, %s2443_s27  ;;  %p2449_p2 = scmp.lt.s32.totalorder %s2443_s27, %s2443_s27 }
0x2929   :  { %642 = vst.msk [vmem:[#allocation6 + $0x8] sm:$0xff] %vm46_vm0, %v639_v10 }
0x292a   :  { %p2450_p3 = por %p2449_p2, %p2448_p1 }
0x292c   :  { %v1073_v54 = vpop.permute.xlu0 %1072  ;;  %p2451_p4 = pnand %p2450_p3, %p2444_p0 }
0x292d   :  { %1076 = vst.msk [vmem:[#allocation6 + $0x18] sm:$0xff] %vm46_vm0, %v1073_v54 }
0x2930   :  { %v1507_v29 = vpop.permute.xlu0 %1506  ;;  %v1951_v35 = vld [vmem:[#allocation6 + $0x8] sm:$0xff] }
0x2931   :  { %1510 = vst.msk [vmem:[#allocation6 + $0x28] sm:$0xff] %vm46_vm0, %v1507_v29  ;;  %v1966_v8 = vmul.f32 %v2180_v58, %v1951_v35 }
0x2933   :  { %v1976_v37 = vsel %vm46_vm0, %v1966_v8, 0.0 }
0x2934   :  { %v1953_v46 = vld [vmem:[#allocation6 + $0x18] sm:$0xff] }
0x2935   :  { %v1968_v30 = vmul.f32 %v2180_v58, %v1953_v46 }
0x2937   :  { %v1982_v31 = vsel %vm46_vm0, %v1968_v30, 0.0 }
0x2938   :  { %1983 = vadd.xlane.f32.xlu1 %v1982_v31  ;;  %v1955_v32 = vld [vmem:[#allocation6 + $0x28] sm:$0xff] }
0x2939   :  { %v1970_v33 = vmul.f32 %v2180_v58, %v1955_v32 }
0x293b   :  { %v1988_v34 = vsel %vm46_vm0, %v1970_v33, 0.0 }
0x293c   :  { %1989 = vadd.xlane.f32.xlu1 %v1988_v34 }
0x2946   :  { %1977 = vadd.xlane.f32.xlu0 %v1976_v37 }
0x294a   :  { %1980 = vadd.xlane.f32.xlu0 %v1979_v39 }
0x294e   :  { %1986 = vadd.xlane.f32.xlu0 %v1985_v45 }
0x2952   :  { %1992 = vadd.xlane.f32.xlu0 %v1991_v48 }
0x2968   :  { %2004 = vperm.xlu0 %2340, %v2181_v49  }
0x2999   :  { %v1941_v50 = vpop.permute.xlu0 %1940 }
0x299a   :  { %1944 = vst.msk [vmem:[#allocation6 + $0x38] sm:$0xff] %vm46_vm0, %v1941_v50  ;;  %1946 = vst.msk [vmem:[#allocation2 + $0x8] sm:$0xff] %vm46_vm0, %v1941_v50 }
0x299b   :  { %1949 = vst.msk [vmem:[#allocation8 + $0x8] sm:$0xff] %vm46_vm0, %v1941_v50 }
0x29a1   :  { %v1957_v52 = vld [vmem:[#allocation6 + $0x38] sm:$0xff] }
0x29a2   :  { %v1972_v53 = vmul.f32 %v2180_v58, %v1957_v52 }
0x29a4   :  { %v1994_v55 = vsel %vm46_vm0, %v1972_v53, 0.0 }
0x29a5   :  { %1995 = vadd.xlane.f32.xlu1 %v1994_v55 }
0x29a6   :  { %2454 = shalt.err (!%p2451_p4)
}
0x29a7   :  { %s2455_s21 = scalar_lea.hbm %s3113_s11, 256 }
0x29a8   :  { %p2456_p5 = scmp.ne.s32.totalorder %s3113_s11, %s2455_s21  ;;  %p2459_p6 = scmp.lt.u32.totalorder %s2455_s21, %s3113_s11 }
0x29aa   :  { %p2461_p7 = pnand %p2459_p6, %p2456_p5 }
0x29ac   :  { %2464 = shalt.err (!%p2461_p7)
}
0x29ad   :  { %s2524_s26 = smov 128   ;;  %s2525_s28 = smov 8  }
0x29ae   :  { %2097 = dma.vmem_to_hbm [thread:$0]  %s2092_s4, 256, %s3113_s11, [#allocation9], %s2524_s26, %s2524_s26, %s2525_s28  }
0x29af   :  { %s2465_s5 = scalar_lea.vmem %s3059_s16, 1024  ;;  %p2470_p9 = scmp.lt.s32.totalorder %s3059_s16, %s3059_s16 }
0x29b0   :  { %p2466_p8 = scmp.ne.s32.totalorder %s3059_s16, %s2465_s5  ;;  %p2471_p10 = scmp.lt.s32.totalorder %s2465_s5, %s2465_s5 }
0x29b2   :  { %p2472_p11 = por %p2471_p10, %p2470_p9 }
0x29b4   :  { %p2473_p12 = pnand %p2472_p11, %p2466_p8 }
0x29b6   :  { %2476 = shalt.err (!%p2473_p12)
}
0x29b7   :  { %s2477_s14 = scalar_lea.hbm %s3112_s10, 1024 }
0x29b8   :  { %p2478_p13 = scmp.ne.s32.totalorder %s3112_s10, %s2477_s14  ;;  %p2481_p0 = scmp.lt.u32.totalorder %s2477_s14, %s3112_s10 }
0x29ba   :  { %p2483_p1 = pnand %p2481_p0, %p2478_p13 }
0x29bc   :  { %2486 = shalt.err (!%p2483_p1)
}
0x29bd   :  { %2085 = dma.vmem_to_hbm [thread:$0]  %s3059_s16, 1024, %s3112_s10, [#allocation7], %s2524_s26, %s2524_s26, %s2525_s28   ;;  %v2023_v19 = vlaneseq  ;;  %v1975_v62 = vpop.xlane.xlu1 %1974  ;;  %vm2057_vm8 = vcmask 1041409   ;;  %vm2059_vm9 = vcmask 1042434   ;;  %vm2061_vm10 = vcmask 1043459  }
0x29be   :  { %vm2063_vm11 = vcmask 1044484   ;;  %vm2065_vm12 = vcmask 1045509   ;;  %vm2067_vm13 = vcmask 1046534   ;;  %s2526_s10 = smov [#allocation10]   ;;  %vm2069_vm14 = vcmask 1047559  }
0x29bf   :  { %v2024_v57 = vand.u32 127, %v2023_v19  ;;  %v2026_v60 = vshrl.u32 %v2023_v19, 7  ;;  %s2104_s20 = sshll.u32 %s2526_s10, 4  ;;  %vm2072_vm15 = vcmask 64512   ;;  %s2105_s20 = int_to_ptr.vmem [resolvable:$true] %s2104_s20 }
0x29c0   :  { %s2487_s1 = scalar_lea.vmem %s2105_s20, 128  ;;  %p2492_p3 = scmp.lt.s32.totalorder %s2105_s20, %s2105_s20 }
0x29c1   :  { %v2027_v63 = vsub.s32 %v2024_v57, %v2026_v60  ;;  %p2488_p2 = scmp.ne.s32.totalorder %s2105_s20, %s2487_s1  ;;  %p2493_p4 = scmp.lt.s32.totalorder %s2487_s1, %s2487_s1 }
0x29c3   :  { %p2494_p5 = por %p2493_p4, %p2492_p3 }
0x29c5   :  { %v1984_v6 = vpop.xlane.xlu1 %1983  ;;  %p2495_p6 = pnand %p2494_p5, %p2488_p2 }
0x29c9   :  { %v1990_v21 = vpop.xlane.xlu1 %1989 }
0x29d3   :  { %v1978_v56 = vpop.xlane.xlu0 %1977 }
0x29d7   :  { %v1981_v17 = vpop.xlane.xlu0 %1980 }
0x29db   :  { %v1987_v18 = vpop.xlane.xlu0 %1986 }
0x29df   :  { %v1993_v20 = vpop.xlane.xlu0 %1992 }
0x29e7   :  { %v2005_v61 = vpop.permute.xlu0 %2004 }
0x29e8   :  { %v2007_v1 = vadd.f32 %v2005_v61, %v1975_v62  ;;  %v2008_v2 = vadd.f32 %v2005_v61, %v1978_v56  ;;  %v2009_v42 = vadd.f32 %v2005_v61, %v1981_v17  ;;  %v2010_v13 = vadd.f32 %v2005_v61, %v1984_v6 }
0x29e9   :  { %v2011_v14 = vadd.f32 %v2005_v61, %v1987_v18  ;;  %v2012_v22 = vadd.f32 %v2005_v61, %v1990_v21  ;;  %v2013_v59 = vadd.f32 %v2005_v61, %v1993_v20 }
0x29ea   :  { %v2028_v41 = vrot.slane %v2007_v1, %v2027_v63  ;;  %v2032_v3 = vrot.slane %v2008_v2, %v2027_v63  ;;  %v2036_v9 = vrot.slane %v2009_v42, %v2027_v63  ;;  %v2040_v16 = vrot.slane %v2010_v13, %v2027_v63 }
0x29eb   :  { %v2044_v23 = vrot.slane %v2011_v14, %v2027_v63  ;;  %v2048_v24 = vrot.slane %v2012_v22, %v2027_v63  ;;  %v2052_v4 = vrot.slane %v2013_v59, %v2027_v63 }
0x29ec   :  { %v2058_v11 = vsel %vm2057_vm8, %v2032_v3, %v2028_v41 }
0x29ed   :  { %v2060_v15 = vsel %vm2059_vm9, %v2036_v9, %v2058_v11 }
0x29ee   :  { %v2062_v5 = vsel %vm2061_vm10, %v2040_v16, %v2060_v15 }
0x29ef   :  { %v2064_v7 = vsel %vm2063_vm11, %v2044_v23, %v2062_v5 }
0x29f0   :  { %v2066_v51 = vsel %vm2065_vm12, %v2048_v24, %v2064_v7 }
0x29f1   :  { %v2068_v0 = vsel %vm2067_vm13, %v2052_v4, %v2066_v51 }
0x2a32   :  { %v1996_v12 = vpop.xlane.xlu1 %1995 }
0x2a33   :  { %v2014_v58 = vadd.f32 %v2005_v61, %v1996_v12 }
0x2a35   :  { %v2056_v25 = vrot.slane %v2014_v58, %v2027_v63 }
0x2a37   :  { %v2070_v26 = vsel %vm2069_vm14, %v2056_v25, %v2068_v0 }
0x2a38   :  { %2073 = vst.msk [vmem:[#allocation10] sm:$0xff] %vm2072_vm15, %v2070_v26 }
0x2a39   :  { %2498 = shalt.err (!%p2495_p6)
}
0x2a3a   :  { %s2499_s4 = scalar_lea.hbm %s3114_s12, 128 }
0x2a3b   :  { %p2500_p7 = scmp.ne.s32.totalorder %s3114_s12, %s2499_s4  ;;  %p2503_p8 = scmp.lt.u32.totalorder %s2499_s4, %s3114_s12 }
0x2a3d   :  { %p2505_p9 = pnand %p2503_p8, %p2500_p7 }
0x2a3f   :  { %2508 = shalt.err (!%p2505_p9)
}
0x2a40   :  { %2107 = dma.vmem_to_hbm [thread:$0]  %s2105_s20, 128, %s3114_s12, [#allocation9]  }
0x2a41   :  { %2509 = dma.done.wait [#allocation7], 1024  }
0x2a42   :  { %2510 = vsyncadd [#allocation7], 4294966272 }
0x2a43   :  { %2511 = dma.done.wait [#allocation9], 384  }
0x2a44   :  { %2512 = vsyncadd [#allocation9], 4294966912 }
0x2a45   :  { %2117 = vsyncpa [#allocation7], 1 }
0x2a46   :  { %2118 = vsyncpa [#allocation9], 1 }

</bundles_post_ra>
